<compile_context>
chip_gen: v5e
topology: v5e:2x2
jax: 0.10.0
libtpu: 0.0.40
codegen_flags: <defaults>
</compile_context>

<pallas_src>
from functools import partial

import jax
import jax.numpy as jnp
from jax import lax
from jax.experimental import pallas as pl
from jax.experimental.pallas import tpu as pltpu


# ----------------------------------------------------------------------------
# helpers
# ----------------------------------------------------------------------------

def _round_up(x, m):
    return ((x + m - 1) // m) * m


_TM_CAP = 256          # row tile cap (fits v7x 64 MiB VMEM w/ double buffering)
_TN_CAP = 256          # output-lane tile cap (>=256 for v6e/v7x 256x256 MXU)
_TK_CAP = 512          # contraction tile cap
_VMEM_LIMIT = 32 * 1024 * 1024   # explicit, safe on v5e/v6e/v7x


def _erf_poly(x):
    # Abramowitz & Stegun 7.1.26 rational approximation, |err| < 1.5e-7,
    # built only from Mosaic-supported elementwise primitives (exp/abs/where).
    a1, a2, a3, a4, a5 = (0.254829592, -0.284496736, 1.421413741,
                          -1.453152027, 1.061405429)
    p = 0.3275911
    s = jnp.where(x >= 0.0, 1.0, -1.0)
    ax = jnp.abs(x)
    t = 1.0 / (1.0 + p * ax)
    poly = ((((a5 * t + a4) * t + a3) * t + a2) * t + a1) * t
    return s * (1.0 - poly * jnp.exp(-ax * ax))


def _gelu_exact(x):
    # exact (erf) GELU, matching torch.nn.functional.gelu default
    return 0.5 * x * (1.0 + _erf_poly(x * 0.7071067811865476))


# ----------------------------------------------------------------------------
# Tiled matmul (+ bias) (+ fused residual add) with optional K-accumulation
# ----------------------------------------------------------------------------

def pallas_matmul(x, w, b=None, residual=None):
    """x:(M,K) @ w:(K,N) [+ b:(N,)] [+ residual:(M,N)] -> (M,N) f32."""
    M, K = x.shape
    K2, N = w.shape
    assert K == K2

    tm = _round_up(M, 8) if M <= _TM_CAP else _TM_CAP
    tn = N if N <= _TN_CAP else _TN_CAP
    tk = K if K <= _TK_CAP else _TK_CAP
    Mp, Np, Kp = _round_up(M, tm), _round_up(N, tn), _round_up(K, tk)

    xp = jnp.pad(x, ((0, Mp - M), (0, Kp - K)))
    wp = jnp.pad(w, ((0, Kp - K), (0, Np - N)))
    bias = jnp.zeros((N,), jnp.float32) if b is None else b.astype(jnp.float32)
    bp = jnp.pad(bias, (0, Np - N)).reshape(1, Np)
    has_res = residual is not None
    if has_res:
        rp = jnp.pad(residual.astype(jnp.float32),
                     ((0, Mp - M), (0, Np - N)))

    nk = Kp // tk
    flops = 2 * Mp * Np * Kp
    bytes_acc = 4 * (Mp * Kp + Kp * Np + Mp * Np * (2 if has_res else 1))

    if nk == 1:
        # ---- single-K fast path: no accumulator scratch, 2-D grid ----------
        if has_res:
            def kernel(x_ref, w_ref, b_ref, r_ref, o_ref):
                o_ref[...] = (jnp.dot(x_ref[...], w_ref[...],
                                      preferred_element_type=jnp.float32)
                              + b_ref[...] + r_ref[...])
        else:
            def kernel(x_ref, w_ref, b_ref, o_ref):
                o_ref[...] = (jnp.dot(x_ref[...], w_ref[...],
                                      preferred_element_type=jnp.float32)
                              + b_ref[...])

        in_specs = [pl.BlockSpec((tm, tk), lambda i, j: (i, 0)),
                    pl.BlockSpec((tk, tn), lambda i, j: (0, j)),
                    pl.BlockSpec((1, tn), lambda i, j: (0, j))]
        operands = [xp, wp, bp]
        if has_res:
            in_specs.append(pl.BlockSpec((tm, tn), lambda i, j: (i, j)))
            operands.append(rp)

        out = pl.pallas_call(
            kernel,
            out_shape=jax.ShapeDtypeStruct((Mp, Np), jnp.float32),
            grid=(Mp // tm, Np // tn),
            in_specs=in_specs,
            out_specs=pl.BlockSpec((tm, tn), lambda i, j: (i, j)),
            compiler_params=pltpu.CompilerParams(
                dimension_semantics=("parallel", "parallel"),
                vmem_limit_bytes=_VMEM_LIMIT),
            cost_estimate=pl.CostEstimate(
                flops=flops, transcendentals=0, bytes_accessed=bytes_acc),
        )(*operands)
    else:
        # ---- general path: K-accumulation in a VMEM f32 scratch ------------
        if has_res:
            def kernel(x_ref, w_ref, b_ref, r_ref, o_ref, acc_ref):
                @pl.when(pl.program_id(2) == 0)
                def _():
                    acc_ref[...] = jnp.zeros_like(acc_ref)

                acc_ref[...] += jnp.dot(x_ref[...], w_ref[...],
                                        preferred_element_type=jnp.float32)

                @pl.when(pl.program_id(2) == pl.num_programs(2) - 1)
                def _():
                    o_ref[...] = acc_ref[...] + b_ref[...] + r_ref[...]
        else:
            def kernel(x_ref, w_ref, b_ref, o_ref, acc_ref):
                @pl.when(pl.program_id(2) == 0)
                def _():
                    acc_ref[...] = jnp.zeros_like(acc_ref)

                acc_ref[...] += jnp.dot(x_ref[...], w_ref[...],
                                        preferred_element_type=jnp.float32)

                @pl.when(pl.program_id(2) == pl.num_programs(2) - 1)
                def _():
                    o_ref[...] = acc_ref[...] + b_ref[...]

        in_specs = [pl.BlockSpec((tm, tk), lambda i, j, k: (i, k)),
                    pl.BlockSpec((tk, tn), lambda i, j, k: (k, j)),
                    pl.BlockSpec((1, tn), lambda i, j, k: (0, j))]
        operands = [xp, wp, bp]
        if has_res:
            in_specs.append(pl.BlockSpec((tm, tn), lambda i, j, k: (i, j)))
            operands.append(rp)

        out = pl.pallas_call(
            kernel,
            out_shape=jax.ShapeDtypeStruct((Mp, Np), jnp.float32),
            grid=(Mp // tm, Np // tn, nk),
            in_specs=in_specs,
            out_specs=pl.BlockSpec((tm, tn), lambda i, j, k: (i, j)),
            scratch_shapes=[pltpu.VMEM((tm, tn), jnp.float32)],
            compiler_params=pltpu.CompilerParams(
                dimension_semantics=("parallel", "parallel", "arbitrary"),
                vmem_limit_bytes=_VMEM_LIMIT),
            cost_estimate=pl.CostEstimate(
                flops=flops, transcendentals=0, bytes_accessed=bytes_acc),
        )(*operands)

    if (Mp, Np) != (M, N):
        out = out[:M, :N]
    return out


# ----------------------------------------------------------------------------
# LayerNorm fused into a matmul prologue (PreNorm -> projection)
#   K (= model dim) is kept fully resident (small for this model).
# ----------------------------------------------------------------------------

def pallas_ln_matmul(x, gamma, beta, w, b=None, eps=1e-5):
    """(LayerNorm(x) @ w) [+ b].  x:(M,K), w:(K,N)."""
    M, K = x.shape
    _, N = w.shape

    tm = _round_up(M, 8) if M <= _TM_CAP else _TM_CAP
    tn = N if N <= _TN_CAP else _TN_CAP
    Mp, Np = _round_up(M, tm), _round_up(N, tn)

    xp = jnp.pad(x, ((0, Mp - M), (0, 0)))
    wp = jnp.pad(w, ((0, 0), (0, Np - N)))
    bias = jnp.zeros((N,), jnp.float32) if b is None else b.astype(jnp.float32)
    bp = jnp.pad(bias, (0, Np - N)).reshape(1, Np)
    g2 = gamma.reshape(1, K).astype(jnp.float32)
    b2 = beta.reshape(1, K).astype(jnp.float32)

    def kernel(x_ref, g_ref, bb_ref, w_ref, bias_ref, o_ref):
        xv = x_ref[...]
        mu = jnp.mean(xv, axis=-1, keepdims=True)
        var = jnp.mean(jnp.square(xv - mu), axis=-1, keepdims=True)
        xn = (xv - mu) * lax.rsqrt(var + eps) * g_ref[...] + bb_ref[...]
        o_ref[...] = jnp.dot(xn, w_ref[...],
                             preferred_element_type=jnp.float32) + bias_ref[...]

    out = pl.pallas_call(
        kernel,
        out_shape=jax.ShapeDtypeStruct((Mp, Np), jnp.float32),
        grid=(Mp // tm, Np // tn),
        in_specs=[pl.BlockSpec((tm, K), lambda i, j: (i, 0)),
                  pl.BlockSpec((1, K), lambda i, j: (0, 0)),
                  pl.BlockSpec((1, K), lambda i, j: (0, 0)),
                  pl.BlockSpec((K, tn), lambda i, j: (0, j)),
                  pl.BlockSpec((1, tn), lambda i, j: (0, j))],
        out_specs=pl.BlockSpec((tm, tn), lambda i, j: (i, j)),
        compiler_params=pltpu.CompilerParams(
            dimension_semantics=("parallel", "parallel"),
            vmem_limit_bytes=_VMEM_LIMIT),
        cost_estimate=pl.CostEstimate(
            flops=2 * Mp * Np * K + 8 * Mp * K, transcendentals=Mp,
            bytes_accessed=4 * (Mp * K + K * Np + Mp * Np)),
    )(xp, g2, b2, wp, bp)
    if (Mp, Np) != (M, N):
        out = out[:M, :N]
    return out


# ----------------------------------------------------------------------------
# LayerNorm + first FF matmul + GEGLU fused:  (LN(x)@wa+ba) * gelu(LN(x)@wg+bg)
# ----------------------------------------------------------------------------

def pallas_ln_geglu(x, gamma, beta, wa, ba, wg, bg, eps=1e-5):
    M, K = x.shape
    _, N = wa.shape

    tm = _round_up(M, 8) if M <= _TM_CAP else _TM_CAP
    tn = N if N <= _TN_CAP else _TN_CAP
    Mp, Np = _round_up(M, tm), _round_up(N, tn)

    xp = jnp.pad(x, ((0, Mp - M), (0, 0)))
    wap = jnp.pad(wa, ((0, 0), (0, Np - N)))
    wgp = jnp.pad(wg, ((0, 0), (0, Np - N)))
    bap = jnp.pad(ba.astype(jnp.float32), (0, Np - N)).reshape(1, Np)
    bgp = jnp.pad(bg.astype(jnp.float32), (0, Np - N)).reshape(1, Np)
    g2 = gamma.reshape(1, K).astype(jnp.float32)
    b2 = beta.reshape(1, K).astype(jnp.float32)

    def kernel(x_ref, g_ref, bb_ref, wa_ref, ba_ref, wg_ref, bg_ref, o_ref):
        xv = x_ref[...]
        mu = jnp.mean(xv, axis=-1, keepdims=True)
        var = jnp.mean(jnp.square(xv - mu), axis=-1, keepdims=True)
        xn = (xv - mu) * lax.rsqrt(var + eps) * g_ref[...] + bb_ref[...]
        a = jnp.dot(xn, wa_ref[...],
                    preferred_element_type=jnp.float32) + ba_ref[...]
        gate = jnp.dot(xn, wg_ref[...],
                       preferred_element_type=jnp.float32) + bg_ref[...]
        o_ref[...] = a * _gelu_exact(gate)

    out = pl.pallas_call(
        kernel,
        out_shape=jax.ShapeDtypeStruct((Mp, Np), jnp.float32),
        grid=(Mp // tm, Np // tn),
        in_specs=[pl.BlockSpec((tm, K), lambda i, j: (i, 0)),
                  pl.BlockSpec((1, K), lambda i, j: (0, 0)),
                  pl.BlockSpec((1, K), lambda i, j: (0, 0)),
                  pl.BlockSpec((K, tn), lambda i, j: (0, j)),
                  pl.BlockSpec((1, tn), lambda i, j: (0, j)),
                  pl.BlockSpec((K, tn), lambda i, j: (0, j)),
                  pl.BlockSpec((1, tn), lambda i, j: (0, j))],
        out_specs=pl.BlockSpec((tm, tn), lambda i, j: (i, j)),
        compiler_params=pltpu.CompilerParams(
            dimension_semantics=("parallel", "parallel"),
            vmem_limit_bytes=_VMEM_LIMIT),
        cost_estimate=pl.CostEstimate(
            flops=4 * Mp * Np * K + 20 * Mp * Np, transcendentals=2 * Mp * Np,
            bytes_accessed=4 * (Mp * K + 2 * K * Np + Mp * Np)),
    )(xp, g2, b2, wap, bap, wgp, bgp)
    if (Mp, Np) != (M, N):
        out = out[:M, :N]
    return out


# ----------------------------------------------------------------------------
# Attention core: QK^T -> softmax -> PV, one (batch*head) per grid step.
# dh is padded to the 128-lane vreg width; no explicit k transpose.
# ----------------------------------------------------------------------------

def _attention_kernel(q_ref, k_ref, v_ref, o_ref, *, scale, nk_valid):
    q = q_ref[0]                                    # (Nq_p, dh_p)
    k = k_ref[0]                                    # (Nk_p, dh_p)
    v = v_ref[0]                                    # (Nk_p, dh_p)
    s = lax.dot_general(q, k, (((1,), (1,)), ((), ())),
                        preferred_element_type=jnp.float32) * scale
    if nk_valid < k.shape[0]:                       # mask padded key columns
        col = lax.broadcasted_iota(jnp.int32, s.shape, 1)
        s = jnp.where(col < nk_valid, s, -1e30)
    m = jnp.max(s, axis=-1, keepdims=True)
    p = jnp.exp(s - m)
    denom = jnp.sum(p, axis=-1, keepdims=True)
    r = pl.reciprocal(denom, approx=True)           # EUP slot
    r = r * (2.0 - denom * r)                       # one Newton step -> ~f32 exact
    p = p * r
    o_ref[0] = jnp.dot(p, v, preferred_element_type=jnp.float32)


def pallas_attention(q, k, v, scale):
    """q:(BH,Nq,dh), k/v:(BH,Nk,dh) -> (BH,Nq,dh)."""
    BH, Nq, dh = q.shape
    Nk = k.shape[1]
    dh_p = _round_up(dh, 128)
    nq_p = _round_up(Nq, 8)
    nk_p = _round_up(Nk, 8)
    qp = jnp.pad(q, ((0, 0), (0, nq_p - Nq), (0, dh_p - dh)))
    kp = jnp.pad(k, ((0, 0), (0, nk_p - Nk), (0, dh_p - dh)))
    vp = jnp.pad(v, ((0, 0), (0, nk_p - Nk), (0, dh_p - dh)))

    out = pl.pallas_call(
        partial(_attention_kernel, scale=scale, nk_valid=Nk),
        out_shape=jax.ShapeDtypeStruct((BH, nq_p, dh_p), jnp.float32),
        grid=(BH,),
        in_specs=[pl.BlockSpec((1, nq_p, dh_p), lambda i: (i, 0, 0)),
                  pl.BlockSpec((1, nk_p, dh_p), lambda i: (i, 0, 0)),
                  pl.BlockSpec((1, nk_p, dh_p), lambda i: (i, 0, 0))],
        out_specs=pl.BlockSpec((1, nq_p, dh_p), lambda i: (i, 0, 0)),
        compiler_params=pltpu.CompilerParams(
            dimension_semantics=("parallel",),
            vmem_limit_bytes=_VMEM_LIMIT),
        cost_estimate=pl.CostEstimate(
            flops=4 * BH * nq_p * nk_p * dh_p,
            transcendentals=BH * nq_p * nk_p,
            bytes_accessed=4 * BH * (2 * nq_p * dh_p + 2 * nk_p * dh_p)),
    )(qp, kp, vp)
    return out[:, :Nq, :dh]


# ----------------------------------------------------------------------------
# Rotary position embedding (half-split / GPT-NeoX convention)
# TODO(synk): exact pairing convention of the reference rotary impl unverified;
#             applied at XLA level since dh != 128-lane width prevents a clean
#             in-kernel pltpu.roll on the padded layout.
# ----------------------------------------------------------------------------

def rotary_freqs(n, dim_head):
    inv_freq = 1.0 / (10000.0 ** (jnp.arange(0, dim_head, 2,
                                              dtype=jnp.float32) / dim_head))
    t = jnp.arange(n, dtype=jnp.float32)
    freqs = t[:, None] * inv_freq[None, :]
    emb = jnp.concatenate([freqs, freqs], axis=-1)
    return jnp.cos(emb), jnp.sin(emb)


def _rotate_half(x):
    d = x.shape[-1] // 2
    return jnp.concatenate([-x[..., d:], x[..., :d]], axis=-1)


def apply_rotary(x, cos, sin):
    # x: (BH, N, dh); cos/sin: (N, dh)
    return x * cos[None] + _rotate_half(x) * sin[None]


# ----------------------------------------------------------------------------
# PerceiverIO building blocks
# ----------------------------------------------------------------------------

def attention_block(x, context, p, heads, dim_head,
                    rot_q=None, rot_k=None, share_qkv=False, residual=None):
    """PreNorm + lucidrains-style Attention (to_q / to_kv no bias, to_out).

    If `residual` is given it is fused into the output-projection epilogue.
    """
    B, Nq, Dq = x.shape
    Nk = context.shape[1]
    inner = heads * dim_head
    scale = dim_head ** -0.5

    if share_qkv:  # latent self-attention: one fused LN + qkv projection
        wqkv = jnp.concatenate([p['wq'], p['wkv']], axis=1)
        qkv = pallas_ln_matmul(x.reshape(B * Nq, Dq), p['ln_g'], p['ln_b'], wqkv)
        q = qkv[:, :inner]
        k = qkv[:, inner:2 * inner]
        v = qkv[:, 2 * inner:]
    else:          # cross-attention: separate LN for queries and context
        q = pallas_ln_matmul(x.reshape(B * Nq, Dq),
                             p['ln_g'], p['ln_b'], p['wq'])
        kv = pallas_ln_matmul(context.reshape(B * Nk, context.shape[-1]),
                              p['ctx_ln_g'], p['ctx_ln_b'], p['wkv'])
        k, v = kv[:, :inner], kv[:, inner:]

    def split_heads(t, n):
        return (t.reshape(B, n, heads, dim_head)
                 .transpose(0, 2, 1, 3)
                 .reshape(B * heads, n, dim_head))

    q = split_heads(q, Nq)
    k = split_heads(k, Nk)
    v = split_heads(v, Nk)

    if rot_q is not None:
        q = apply_rotary(q, *rot_q)
    if rot_k is not None:
        k = apply_rotary(k, *rot_k)

    out = pallas_attention(q, k, v, scale)                     # (BH, Nq, dh)
    out = (out.reshape(B, heads, Nq, dim_head)
              .transpose(0, 2, 1, 3)
              .reshape(B * Nq, inner))
    res2d = None if residual is None else residual.reshape(B * Nq, -1)
    out = pallas_matmul(out, p['wo'], p['bo'], residual=res2d)
    return out.reshape(B, Nq, -1)


def feedforward_block(x3d, p, residual=None):
    """PreNorm + GEGLU FeedForward; LN/bias/GEGLU fused into w1, residual
    (if any) fused into the w2 epilogue."""
    B, N, D = x3d.shape
    h = pallas_ln_geglu(x3d.reshape(B * N, D), p['ln_g'], p['ln_b'],
                        p['wa'], p['ba'], p['wg'], p['bg'])
    res2d = None if residual is None else residual.reshape(B * N, D)
    out = pallas_matmul(h, p['w2'], p['b2'], residual=res2d)
    return out.reshape(B, N, D)


# ----------------------------------------------------------------------------
# Full forward
# ----------------------------------------------------------------------------

def ro_perceiver_lm(params, tokens, cfg):
    # TODO(synk): encoder key-mask handling not implemented (mask=None path).
    B, N = tokens.shape
    D = cfg['dim']

    x = params['token_emb'][tokens] + params['pos_emb'][:N][None, :, :]
    queries = x

    rot = rotary_freqs(N, cfg['cross_dim_head'])   # rotary over token positions

    lat = jnp.broadcast_to(params['latents'][None],
                           (B, cfg['num_latents'], cfg['latent_dim']))

    # --- encoder cross attention (latents attend to tokens, rotary on keys) ---
    ca = params['cross_attn']
    lat = attention_block(lat, x, ca, cfg['cross_heads'], cfg['cross_dim_head'],
                          rot_q=None, rot_k=rot, residual=lat)
    lat = feedforward_block(lat, params['cross_ff'], residual=lat)

    # --- latent self-attention stack ---
    for layer in params['layers']:
        lat = attention_block(lat, lat, layer['attn'], cfg['latent_heads'],
                              cfg['latent_dim_head'], share_qkv=True,
                              residual=lat)
        lat = feedforward_block(lat, layer['ff'], residual=lat)

    # --- decoder cross attention (queries attend to latents, rotary on q) ---
    da = params['dec_attn']
    dec = attention_block(queries, lat, da, cfg['cross_heads'],
                          cfg['cross_dim_head'], rot_q=rot, rot_k=None)
    dec = feedforward_block(dec, params['dec_ff'], residual=dec)

    # --- to_logits ---
    logits = pallas_matmul(dec.reshape(B * N, D),
                           params['to_logits_w'], params['to_logits_b'])
    return logits.reshape(B, N, cfg['num_tokens'])


# ----------------------------------------------------------------------------
# Deterministic parameter initialization (shapes follow the module __init__)
# ----------------------------------------------------------------------------

def init_params(key, cfg):
    keys = iter(jax.random.split(key, 64))

    def nrm(shape, scale=0.02):
        return (scale * jax.random.normal(next(keys), shape)).astype(jnp.float32)

    def attn_params(q_dim, ctx_dim, heads, dim_head, with_ctx_ln):
        inner = heads * dim_head
        p = dict(
            ln_g=jnp.ones((q_dim,), jnp.float32),
            ln_b=jnp.zeros((q_dim,), jnp.float32),
            wq=nrm((q_dim, inner)),
            wkv=nrm((ctx_dim, 2 * inner)),
            wo=nrm((inner, q_dim)),
            bo=jnp.zeros((q_dim,), jnp.float32),
        )
        if with_ctx_ln:
            p['ctx_ln_g'] = jnp.ones((ctx_dim,), jnp.float32)
            p['ctx_ln_b'] = jnp.zeros((ctx_dim,), jnp.float32)
        return p

    def ff_params(dim, mult=4):
        return dict(
            ln_g=jnp.ones((dim,), jnp.float32),
            ln_b=jnp.zeros((dim,), jnp.float32),
            wa=nrm((dim, dim * mult)),            # first half of GEGLU Linear
            ba=jnp.zeros((dim * mult,), jnp.float32),
            wg=nrm((dim, dim * mult)),            # gate half of GEGLU Linear
            bg=jnp.zeros((dim * mult,), jnp.float32),
            w2=nrm((dim * mult, dim)),
            b2=jnp.zeros((dim,), jnp.float32),
        )

    return dict(
        token_emb=nrm((cfg['num_tokens'], cfg['dim'])),
        pos_emb=nrm((cfg['max_seq_len'], cfg['dim'])),
        latents=nrm((cfg['num_latents'], cfg['latent_dim'])),
        cross_attn=attn_params(cfg['latent_dim'], cfg['dim'],
                               cfg['cross_heads'], cfg['cross_dim_head'], True),
        cross_ff=ff_params(cfg['latent_dim']),
        layers=[dict(attn=attn_params(cfg['latent_dim'], cfg['latent_dim'],
                                      cfg['latent_heads'],
                                      cfg['latent_dim_head'], False),
                     ff=ff_params(cfg['latent_dim']))
                for _ in range(cfg['depth'])],
        dec_attn=attn_params(cfg['dim'], cfg['latent_dim'],
                             cfg['cross_heads'], cfg['cross_dim_head'], True),
        dec_ff=ff_params(cfg['dim']),
        to_logits_w=nrm((cfg['dim'], cfg['num_tokens'])),
        to_logits_b=jnp.zeros((cfg['num_tokens'],), jnp.float32),
    )


# ----------------------------------------------------------------------------

if __name__ == "__main__":
    cfg = dict(num_tokens=64, dim=32, max_seq_len=64, depth=2,
               num_latents=8, latent_dim=32,
               cross_heads=1, latent_heads=2,
               cross_dim_head=16, latent_dim_head=16)

    key = jax.random.PRNGKey(0)
    pkey, tkey = jax.random.split(key)
    params = init_params(pkey, cfg)

    B, N = 2, 8
    tokens = jax.random.randint(tkey, (B, N), 0, cfg['num_tokens'],
                                dtype=jnp.int32)

    fwd = jax.jit(partial(ro_perceiver_lm, cfg=cfg))
    logits = fwd(params, tokens)
    jax.block_until_ready(logits)

    assert logits.shape == (B, N, cfg['num_tokens'])
    assert logits.dtype == jnp.float32
    assert bool(jnp.all(jnp.isfinite(logits)))
    print("KERNEL_OK")
</pallas_src>

<mosaic_0001>
module attributes {stable_mosaic.version = 11 : i64} {
  func.func @kernel(%arg0: i32, %arg1: i32, %arg2: memref<16x32xf32, #tpu.memory_space<vmem>>, %arg3: memref<1x32xf32, #tpu.memory_space<vmem>>, %arg4: memref<1x32xf32, #tpu.memory_space<vmem>>, %arg5: memref<32x32xf32, #tpu.memory_space<vmem>>, %arg6: memref<1x32xf32, #tpu.memory_space<vmem>>, %arg7: memref<16x32xf32, #tpu.memory_space<vmem>>) attributes {dimension_semantics = [#tpu.dimension_semantics<parallel>, #tpu.dimension_semantics<parallel>], iteration_bounds = array<i64: 1, 1>, scalar_prefetch = 0 : i64, scratch_operands = 0 : i64, tpu.core_type = #tpu.core_type<tc>, window_params = [{transform_indices = @transform_0, window_bounds = array<i64: 16, 32>}, {pipeline_mode = #tpu.pipeline_mode<synchronous>, transform_indices = @transform_1, window_bounds = array<i64: 1, 32>}, {pipeline_mode = #tpu.pipeline_mode<synchronous>, transform_indices = @transform_2, window_bounds = array<i64: 1, 32>}, {transform_indices = @transform_3, window_bounds = array<i64: 32, 32>}, {transform_indices = @transform_4, window_bounds = array<i64: 1, 32>}, {transform_indices = @transform_5, window_bounds = array<i64: 16, 32>}]} {
    %c0 = arith.constant 0 : index
    %c0_0 = arith.constant 0 : index
    %0 = vector.load %arg2[%c0, %c0_0] : memref<16x32xf32, #tpu.memory_space<vmem>>, vector<16x32xf32>
    %cst = arith.constant dense<0.000000e+00> : vector<16xf32>
    %1 = vector.multi_reduction <add>, %0, %cst [1] : vector<16x32xf32> to vector<16xf32>
    %2 = vector.shape_cast %1 : vector<16xf32> to vector<16x1xf32>
    %cst_1 = arith.constant 3.200000e+01 : f32
    %3 = vector.broadcast %cst_1 : f32 to vector<16x1xf32>
    %4 = arith.divf %2, %3 : vector<16x1xf32>
    %5 = vector.broadcast %4 : vector<16x1xf32> to vector<16x32xf32>
    %6 = arith.subf %0, %5 : vector<16x32xf32>
    %7 = arith.mulf %6, %6 : vector<16x32xf32>
    %cst_2 = arith.constant dense<0.000000e+00> : vector<16xf32>
    %8 = vector.multi_reduction <add>, %7, %cst_2 [1] : vector<16x32xf32> to vector<16xf32>
    %9 = vector.shape_cast %8 : vector<16xf32> to vector<16x1xf32>
    %cst_3 = arith.constant 3.200000e+01 : f32
    %10 = vector.broadcast %cst_3 : f32 to vector<16x1xf32>
    %11 = arith.divf %9, %10 : vector<16x1xf32>
    %12 = vector.broadcast %4 : vector<16x1xf32> to vector<16x32xf32>
    %13 = arith.subf %0, %12 : vector<16x32xf32>
    %cst_4 = arith.constant 9.99999974E-6 : f32
    %14 = vector.broadcast %cst_4 : f32 to vector<16x1xf32>
    %15 = arith.addf %11, %14 : vector<16x1xf32>
    %16 = math.rsqrt %15 : vector<16x1xf32>
    %17 = vector.broadcast %16 : vector<16x1xf32> to vector<16x32xf32>
    %18 = arith.mulf %13, %17 : vector<16x32xf32>
    %c0_5 = arith.constant 0 : index
    %c0_6 = arith.constant 0 : index
    %19 = vector.load %arg3[%c0_5, %c0_6] : memref<1x32xf32, #tpu.memory_space<vmem>>, vector<1x32xf32>
    %20 = vector.broadcast %19 : vector<1x32xf32> to vector<16x32xf32>
    %21 = arith.mulf %18, %20 : vector<16x32xf32>
    %c0_7 = arith.constant 0 : index
    %c0_8 = arith.constant 0 : index
    %22 = vector.load %arg4[%c0_7, %c0_8] : memref<1x32xf32, #tpu.memory_space<vmem>>, vector<1x32xf32>
    %23 = vector.broadcast %22 : vector<1x32xf32> to vector<16x32xf32>
    %24 = arith.addf %21, %23 : vector<16x32xf32>
    %c0_9 = arith.constant 0 : index
    %c0_10 = arith.constant 0 : index
    %25 = vector.load %arg5[%c0_9, %c0_10] : memref<32x32xf32, #tpu.memory_space<vmem>>, vector<32x32xf32>
    %cst_11 = arith.constant dense<0.000000e+00> : vector<16x32xf32>
    %26 = tpu.matmul %24, %25, %cst_11 {dimension_numbers = #tpu.dot_dimension_numbers<[1], [0], [0], [1], [0, 0, 1, 1], [], []>} : vector<16x32xf32>, vector<32x32xf32>, vector<16x32xf32> -> vector<16x32xf32>
    %c0_12 = arith.constant 0 : index
    %c0_13 = arith.constant 0 : index
    %27 = vector.load %arg6[%c0_12, %c0_13] : memref<1x32xf32, #tpu.memory_space<vmem>>, vector<1x32xf32>
    %28 = vector.broadcast %27 : vector<1x32xf32> to vector<16x32xf32>
    %29 = arith.addf %26, %28 : vector<16x32xf32>
    %c0_14 = arith.constant 0 : index
    %c0_15 = arith.constant 0 : index
    %30 = vector.load %arg7[%c0_14, %c0_15] : memref<16x32xf32, #tpu.memory_space<vmem>>, vector<16x32xf32>
    tpu.vector_store %arg7[%c0_14, %c0_15], %29 {strides = array<i32>} : memref<16x32xf32, #tpu.memory_space<vmem>>, vector<16x32xf32>,
    return
  }
  func.func @transform_0(%arg0: i32, %arg1: i32) -> (i32, i32) {
    %c0_i32 = arith.constant 0 : i32
    %c0_i32_0 = arith.constant 0 : i32
    return %arg0, %c0_i32 : i32, i32
  }
  func.func @transform_1(%arg0: i32, %arg1: i32) -> (i32, i32) {
    %c0_i32 = arith.constant 0 : i32
    %c0_i32_0 = arith.constant 0 : i32
    %c0_i32_1 = arith.constant 0 : i32
    return %c0_i32, %c0_i32_0 : i32, i32
  }
  func.func @transform_2(%arg0: i32, %arg1: i32) -> (i32, i32) {
    %c0_i32 = arith.constant 0 : i32
    %c0_i32_0 = arith.constant 0 : i32
    %c0_i32_1 = arith.constant 0 : i32
    return %c0_i32, %c0_i32_0 : i32, i32
  }
  func.func @transform_3(%arg0: i32, %arg1: i32) -> (i32, i32) {
    %c0_i32 = arith.constant 0 : i32
    %c0_i32_0 = arith.constant 0 : i32
    return %c0_i32, %arg1 : i32, i32
  }
  func.func @transform_4(%arg0: i32, %arg1: i32) -> (i32, i32) {
    %c0_i32 = arith.constant 0 : i32
    %c0_i32_0 = arith.constant 0 : i32
    return %c0_i32, %arg1 : i32, i32
  }
  func.func @transform_5(%arg0: i32, %arg1: i32) -> (i32, i32) {
    %c0_i32 = arith.constant 0 : i32
    return %arg0, %arg1 : i32, i32
  }
}

module attributes {stable_mosaic.version = 11 : i64} {
  func.func @kernel(%arg0: i32, %arg1: i32, %arg2: memref<16x32xf32, #tpu.memory_space<vmem>>, %arg3: memref<1x32xf32, #tpu.memory_space<vmem>>, %arg4: memref<1x32xf32, #tpu.memory_space<vmem>>, %arg5: memref<32x16xf32, #tpu.memory_space<vmem>>, %arg6: memref<1x16xf32, #tpu.memory_space<vmem>>, %arg7: memref<16x16xf32, #tpu.memory_space<vmem>>) attributes {dimension_semantics = [#tpu.dimension_semantics<parallel>, #tpu.dimension_semantics<parallel>], iteration_bounds = array<i64: 1, 1>, scalar_prefetch = 0 : i64, scratch_operands = 0 : i64, tpu.core_type = #tpu.core_type<tc>, window_params = [{transform_indices = @transform_0, window_bounds = array<i64: 16, 32>}, {pipeline_mode = #tpu.pipeline_mode<synchronous>, transform_indices = @transform_1, window_bounds = array<i64: 1, 32>}, {pipeline_mode = #tpu.pipeline_mode<synchronous>, transform_indices = @transform_2, window_bounds = array<i64: 1, 32>}, {transform_indices = @transform_3, window_bounds = array<i64: 32, 16>}, {transform_indices = @transform_4, window_bounds = array<i64: 1, 16>}, {transform_indices = @transform_5, window_bounds = array<i64: 16, 16>}]} {
    %c0 = arith.constant 0 : index
    %c0_0 = arith.constant 0 : index
    %0 = vector.load %arg2[%c0, %c0_0] : memref<16x32xf32, #tpu.memory_space<vmem>>, vector<16x32xf32>
    %cst = arith.constant dense<0.000000e+00> : vector<16xf32>
    %1 = vector.multi_reduction <add>, %0, %cst [1] : vector<16x32xf32> to vector<16xf32>
    %2 = vector.shape_cast %1 : vector<16xf32> to vector<16x1xf32>
    %cst_1 = arith.constant 3.200000e+01 : f32
    %3 = vector.broadcast %cst_1 : f32 to vector<16x1xf32>
    %4 = arith.divf %2, %3 : vector<16x1xf32>
    %5 = vector.broadcast %4 : vector<16x1xf32> to vector<16x32xf32>
    %6 = arith.subf %0, %5 : vector<16x32xf32>
    %7 = arith.mulf %6, %6 : vector<16x32xf32>
    %cst_2 = arith.constant dense<0.000000e+00> : vector<16xf32>
    %8 = vector.multi_reduction <add>, %7, %cst_2 [1] : vector<16x32xf32> to vector<16xf32>
    %9 = vector.shape_cast %8 : vector<16xf32> to vector<16x1xf32>
    %cst_3 = arith.constant 3.200000e+01 : f32
    %10 = vector.broadcast %cst_3 : f32 to vector<16x1xf32>
    %11 = arith.divf %9, %10 : vector<16x1xf32>
    %12 = vector.broadcast %4 : vector<16x1xf32> to vector<16x32xf32>
    %13 = arith.subf %0, %12 : vector<16x32xf32>
    %cst_4 = arith.constant 9.99999974E-6 : f32
    %14 = vector.broadcast %cst_4 : f32 to vector<16x1xf32>
    %15 = arith.addf %11, %14 : vector<16x1xf32>
    %16 = math.rsqrt %15 : vector<16x1xf32>
    %17 = vector.broadcast %16 : vector<16x1xf32> to vector<16x32xf32>
    %18 = arith.mulf %13, %17 : vector<16x32xf32>
    %c0_5 = arith.constant 0 : index
    %c0_6 = arith.constant 0 : index
    %19 = vector.load %arg3[%c0_5, %c0_6] : memref<1x32xf32, #tpu.memory_space<vmem>>, vector<1x32xf32>
    %20 = vector.broadcast %19 : vector<1x32xf32> to vector<16x32xf32>
    %21 = arith.mulf %18, %20 : vector<16x32xf32>
    %c0_7 = arith.constant 0 : index
    %c0_8 = arith.constant 0 : index
    %22 = vector.load %arg4[%c0_7, %c0_8] : memref<1x32xf32, #tpu.memory_space<vmem>>, vector<1x32xf32>
    %23 = vector.broadcast %22 : vector<1x32xf32> to vector<16x32xf32>
    %24 = arith.addf %21, %23 : vector<16x32xf32>
    %c0_9 = arith.constant 0 : index
    %c0_10 = arith.constant 0 : index
    %25 = vector.load %arg5[%c0_9, %c0_10] : memref<32x16xf32, #tpu.memory_space<vmem>>, vector<32x16xf32>
    %cst_11 = arith.constant dense<0.000000e+00> : vector<16x16xf32>
    %26 = tpu.matmul %24, %25, %cst_11 {dimension_numbers = #tpu.dot_dimension_numbers<[1], [0], [0], [1], [0, 0, 1, 1], [], []>} : vector<16x32xf32>, vector<32x16xf32>, vector<16x16xf32> -> vector<16x16xf32>
    %c0_12 = arith.constant 0 : index
    %c0_13 = arith.constant 0 : index
    %27 = vector.load %arg6[%c0_12, %c0_13] : memref<1x16xf32, #tpu.memory_space<vmem>>, vector<1x16xf32>
    %28 = vector.broadcast %27 : vector<1x16xf32> to vector<16x16xf32>
    %29 = arith.addf %26, %28 : vector<16x16xf32>
    %c0_14 = arith.constant 0 : index
    %c0_15 = arith.constant 0 : index
    %30 = vector.load %arg7[%c0_14, %c0_15] : memref<16x16xf32, #tpu.memory_space<vmem>>, vector<16x16xf32>
    tpu.vector_store %arg7[%c0_14, %c0_15], %29 {strides = array<i32>} : memref<16x16xf32, #tpu.memory_space<vmem>>, vector<16x16xf32>,
    return
  }
  func.func @transform_0(%arg0: i32, %arg1: i32) -> (i32, i32) {
    %c0_i32 = arith.constant 0 : i32
    %c0_i32_0 = arith.constant 0 : i32
    return %arg0, %c0_i32 : i32, i32
  }
  func.func @transform_1(%arg0: i32, %arg1: i32) -> (i32, i32) {
    %c0_i32 = arith.constant 0 : i32
    %c0_i32_0 = arith.constant 0 : i32
    %c0_i32_1 = arith.constant 0 : i32
    return %c0_i32, %c0_i32_0 : i32, i32
  }
  func.func @transform_2(%arg0: i32, %arg1: i32) -> (i32, i32) {
    %c0_i32 = arith.constant 0 : i32
    %c0_i32_0 = arith.constant 0 : i32
    %c0_i32_1 = arith.constant 0 : i32
    return %c0_i32, %c0_i32_0 : i32, i32
  }
  func.func @transform_3(%arg0: i32, %arg1: i32) -> (i32, i32) {
    %c0_i32 = arith.constant 0 : i32
    %c0_i32_0 = arith.constant 0 : i32
    return %c0_i32, %arg1 : i32, i32
  }
  func.func @transform_4(%arg0: i32, %arg1: i32) -> (i32, i32) {
    %c0_i32 = arith.constant 0 : i32
    %c0_i32_0 = arith.constant 0 : i32
    return %c0_i32, %arg1 : i32, i32
  }
  func.func @transform_5(%arg0: i32, %arg1: i32) -> (i32, i32) {
    %c0_i32 = arith.constant 0 : i32
    return %arg0, %arg1 : i32, i32
  }
}

module attributes {stable_mosaic.version = 11 : i64} {
  func.func @_attention_kernel(%arg0: i32, %arg1: memref<1x8x128xf32, #tpu.memory_space<vmem>>, %arg2: memref<1x8x128xf32, #tpu.memory_space<vmem>>, %arg3: memref<1x8x128xf32, #tpu.memory_space<vmem>>, %arg4: memref<1x8x128xf32, #tpu.memory_space<vmem>>) attributes {dimension_semantics = [#tpu.dimension_semantics<parallel>], iteration_bounds = array<i64: 2>, scalar_prefetch = 0 : i64, scratch_operands = 0 : i64, tpu.core_type = #tpu.core_type<tc>, window_params = [{transform_indices = @transform_0, window_bounds = array<i64: 1, 8, 128>}, {transform_indices = @transform_1, window_bounds = array<i64: 1, 8, 128>}, {transform_indices = @transform_2, window_bounds = array<i64: 1, 8, 128>}, {transform_indices = @transform_3, window_bounds = array<i64: 1, 8, 128>}]} {
    %c0 = arith.constant 0 : index
    %c0_0 = arith.constant 0 : index
    %c0_1 = arith.constant 0 : index
    %0 = vector.load %arg1[%c0, %c0_0, %c0_1] : memref<1x8x128xf32, #tpu.memory_space<vmem>>, vector<1x8x128xf32>
    %1 = vector.shape_cast %0 : vector<1x8x128xf32> to vector<8x128xf32>
    %c0_2 = arith.constant 0 : index
    %c0_3 = arith.constant 0 : index
    %c0_4 = arith.constant 0 : index
    %2 = vector.load %arg2[%c0_2, %c0_3, %c0_4] : memref<1x8x128xf32, #tpu.memory_space<vmem>>, vector<1x8x128xf32>
    %3 = vector.shape_cast %2 : vector<1x8x128xf32> to vector<8x128xf32>
    %c0_5 = arith.constant 0 : index
    %c0_6 = arith.constant 0 : index
    %c0_7 = arith.constant 0 : index
    %4 = vector.load %arg3[%c0_5, %c0_6, %c0_7] : memref<1x8x128xf32, #tpu.memory_space<vmem>>, vector<1x8x128xf32>
    %5 = vector.shape_cast %4 : vector<1x8x128xf32> to vector<8x128xf32>
    %cst = arith.constant dense<0.000000e+00> : vector<8x8xf32>
    %6 = tpu.matmul %1, %3, %cst {dimension_numbers = #tpu.dot_dimension_numbers<[1], [1], [0], [0], [0, 0, 1, 0], [], []>} : vector<8x128xf32>, vector<8x128xf32>, vector<8x8xf32> -> vector<8x8xf32>
    %cst_8 = arith.constant 2.500000e-01 : f32
    %7 = vector.broadcast %cst_8 : f32 to vector<8x8xf32>
    %8 = arith.mulf %6, %7 : vector<8x8xf32>
    %cst_9 = arith.constant dense<0xFF800000> : vector<8xf32>
    %9 = vector.multi_reduction <maximumf>, %8, %cst_9 [1] : vector<8x8xf32> to vector<8xf32>
    %10 = vector.shape_cast %9 : vector<8xf32> to vector<8x1xf32>
    %11 = vector.broadcast %10 : vector<8x1xf32> to vector<8x8xf32>
    %12 = arith.subf %8, %11 : vector<8x8xf32>
    %13 = math.exp %12 : vector<8x8xf32>
    %cst_10 = arith.constant dense<0.000000e+00> : vector<8xf32>
    %14 = vector.multi_reduction <add>, %13, %cst_10 [1] : vector<8x8xf32> to vector<8xf32>
    %15 = vector.shape_cast %14 : vector<8xf32> to vector<8x1xf32>
    %16 = tpu.reciprocal %15 {approx = true} : vector<8x1xf32> -> vector<8x1xf32>
    %17 = arith.mulf %15, %16 : vector<8x1xf32>
    %cst_11 = arith.constant 2.000000e+00 : f32
    %18 = vector.broadcast %cst_11 : f32 to vector<8x1xf32>
    %19 = arith.subf %18, %17 : vector<8x1xf32>
    %20 = arith.mulf %16, %19 : vector<8x1xf32>
    %21 = vector.broadcast %20 : vector<8x1xf32> to vector<8x8xf32>
    %22 = arith.mulf %13, %21 : vector<8x8xf32>
    %cst_12 = arith.constant dense<0.000000e+00> : vector<8x128xf32>
    %23 = tpu.matmul %22, %5, %cst_12 {dimension_numbers = #tpu.dot_dimension_numbers<[1], [0], [0], [1], [0, 0, 1, 1], [], []>} : vector<8x8xf32>, vector<8x128xf32>, vector<8x128xf32> -> vector<8x128xf32>
    %c0_13 = arith.constant 0 : index
    %c0_14 = arith.constant 0 : index
    %c0_15 = arith.constant 0 : index
    %24 = vector.load %arg4[%c0_13, %c0_14, %c0_15] : memref<1x8x128xf32, #tpu.memory_space<vmem>>, vector<1x8x128xf32>
    %25 = vector.shape_cast %24 : vector<1x8x128xf32> to vector<8x128xf32>
    %26 = vector.shape_cast %23 : vector<8x128xf32> to vector<1x8x128xf32>
    tpu.vector_store %arg4[%c0_13, %c0_14, %c0_15], %26 {strides = array<i32>} : memref<1x8x128xf32, #tpu.memory_space<vmem>>, vector<1x8x128xf32>,
    return
  }
  func.func @transform_0(%arg0: i32) -> (i32, i32, i32) {
    %c0_i32 = arith.constant 0 : i32
    %c0_i32_0 = arith.constant 0 : i32
    %c0_i32_1 = arith.constant 0 : i32
    return %arg0, %c0_i32, %c0_i32_0 : i32, i32, i32
  }
  func.func @transform_1(%arg0: i32) -> (i32, i32, i32) {
    %c0_i32 = arith.constant 0 : i32
    %c0_i32_0 = arith.constant 0 : i32
    %c0_i32_1 = arith.constant 0 : i32
    return %arg0, %c0_i32, %c0_i32_0 : i32, i32, i32
  }
  func.func @transform_2(%arg0: i32) -> (i32, i32, i32) {
    %c0_i32 = arith.constant 0 : i32
    %c0_i32_0 = arith.constant 0 : i32
    %c0_i32_1 = arith.constant 0 : i32
    return %arg0, %c0_i32, %c0_i32_0 : i32, i32, i32
  }
  func.func @transform_3(%arg0: i32) -> (i32, i32, i32) {
    %c0_i32 = arith.constant 0 : i32
    %c0_i32_0 = arith.constant 0 : i32
    %c0_i32_1 = arith.constant 0 : i32
    return %arg0, %c0_i32, %c0_i32_0 : i32, i32, i32
  }
}

module attributes {stable_mosaic.version = 11 : i64} {
  func.func @kernel(%arg0: i32, %arg1: i32, %arg2: memref<16x16xf32, #tpu.memory_space<vmem>>, %arg3: memref<16x32xf32, #tpu.memory_space<vmem>>, %arg4: memref<1x32xf32, #tpu.memory_space<vmem>>, %arg5: memref<16x32xf32, #tpu.memory_space<vmem>>, %arg6: memref<16x32xf32, #tpu.memory_space<vmem>>) attributes {dimension_semantics = [#tpu.dimension_semantics<parallel>, #tpu.dimension_semantics<parallel>], iteration_bounds = array<i64: 1, 1>, scalar_prefetch = 0 : i64, scratch_operands = 0 : i64, tpu.core_type = #tpu.core_type<tc>, window_params = [{transform_indices = @transform_0, window_bounds = array<i64: 16, 16>}, {transform_indices = @transform_1, window_bounds = array<i64: 16, 32>}, {transform_indices = @transform_2, window_bounds = array<i64: 1, 32>}, {transform_indices = @transform_3, window_bounds = array<i64: 16, 32>}, {transform_indices = @transform_4, window_bounds = array<i64: 16, 32>}]} {
    %c0 = arith.constant 0 : index
    %c0_0 = arith.constant 0 : index
    %0 = vector.load %arg2[%c0, %c0_0] : memref<16x16xf32, #tpu.memory_space<vmem>>, vector<16x16xf32>
    %c0_1 = arith.constant 0 : index
    %c0_2 = arith.constant 0 : index
    %1 = vector.load %arg3[%c0_1, %c0_2] : memref<16x32xf32, #tpu.memory_space<vmem>>, vector<16x32xf32>
    %cst = arith.constant dense<0.000000e+00> : vector<16x32xf32>
    %2 = tpu.matmul %0, %1, %cst {dimension_numbers = #tpu.dot_dimension_numbers<[1], [0], [0], [1], [0, 0, 1, 1], [], []>} : vector<16x16xf32>, vector<16x32xf32>, vector<16x32xf32> -> vector<16x32xf32>
    %c0_3 = arith.constant 0 : index
    %c0_4 = arith.constant 0 : index
    %3 = vector.load %arg4[%c0_3, %c0_4] : memref<1x32xf32, #tpu.memory_space<vmem>>, vector<1x32xf32>
    %4 = vector.broadcast %3 : vector<1x32xf32> to vector<16x32xf32>
    %5 = arith.addf %2, %4 : vector<16x32xf32>
    %c0_5 = arith.constant 0 : index
    %c0_6 = arith.constant 0 : index
    %6 = vector.load %arg5[%c0_5, %c0_6] : memref<16x32xf32, #tpu.memory_space<vmem>>, vector<16x32xf32>
    %7 = arith.addf %5, %6 : vector<16x32xf32>
    %c0_7 = arith.constant 0 : index
    %c0_8 = arith.constant 0 : index
    %8 = vector.load %arg6[%c0_7, %c0_8] : memref<16x32xf32, #tpu.memory_space<vmem>>, vector<16x32xf32>
    tpu.vector_store %arg6[%c0_7, %c0_8], %7 {strides = array<i32>} : memref<16x32xf32, #tpu.memory_space<vmem>>, vector<16x32xf32>,
    return
  }
  func.func @transform_0(%arg0: i32, %arg1: i32) -> (i32, i32) {
    %c0_i32 = arith.constant 0 : i32
    %c0_i32_0 = arith.constant 0 : i32
    return %arg0, %c0_i32 : i32, i32
  }
  func.func @transform_1(%arg0: i32, %arg1: i32) -> (i32, i32) {
    %c0_i32 = arith.constant 0 : i32
    %c0_i32_0 = arith.constant 0 : i32
    return %c0_i32, %arg1 : i32, i32
  }
  func.func @transform_2(%arg0: i32, %arg1: i32) -> (i32, i32) {
    %c0_i32 = arith.constant 0 : i32
    %c0_i32_0 = arith.constant 0 : i32
    return %c0_i32, %arg1 : i32, i32
  }
  func.func @transform_3(%arg0: i32, %arg1: i32) -> (i32, i32) {
    %c0_i32 = arith.constant 0 : i32
    return %arg0, %arg1 : i32, i32
  }
  func.func @transform_4(%arg0: i32, %arg1: i32) -> (i32, i32) {
    %c0_i32 = arith.constant 0 : i32
    return %arg0, %arg1 : i32, i32
  }
}

module attributes {stable_mosaic.version = 11 : i64} {
  func.func @kernel(%arg0: i32, %arg1: i32, %arg2: memref<16x32xf32, #tpu.memory_space<vmem>>, %arg3: memref<1x32xf32, #tpu.memory_space<vmem>>, %arg4: memref<1x32xf32, #tpu.memory_space<vmem>>, %arg5: memref<32x128xf32, #tpu.memory_space<vmem>>, %arg6: memref<1x128xf32, #tpu.memory_space<vmem>>, %arg7: memref<32x128xf32, #tpu.memory_space<vmem>>, %arg8: memref<1x128xf32, #tpu.memory_space<vmem>>, %arg9: memref<16x128xf32, #tpu.memory_space<vmem>>) attributes {dimension_semantics = [#tpu.dimension_semantics<parallel>, #tpu.dimension_semantics<parallel>], iteration_bounds = array<i64: 1, 1>, scalar_prefetch = 0 : i64, scratch_operands = 0 : i64, tpu.core_type = #tpu.core_type<tc>, window_params = [{transform_indices = @transform_0, window_bounds = array<i64: 16, 32>}, {pipeline_mode = #tpu.pipeline_mode<synchronous>, transform_indices = @transform_1, window_bounds = array<i64: 1, 32>}, {pipeline_mode = #tpu.pipeline_mode<synchronous>, transform_indices = @transform_2, window_bounds = array<i64: 1, 32>}, {transform_indices = @transform_3, window_bounds = array<i64: 32, 128>}, {transform_indices = @transform_4, window_bounds = array<i64: 1, 128>}, {transform_indices = @transform_5, window_bounds = array<i64: 32, 128>}, {transform_indices = @transform_6, window_bounds = array<i64: 1, 128>}, {transform_indices = @transform_7, window_bounds = array<i64: 16, 128>}]} {
    %c0 = arith.constant 0 : index
    %c0_0 = arith.constant 0 : index
    %0 = vector.load %arg2[%c0, %c0_0] : memref<16x32xf32, #tpu.memory_space<vmem>>, vector<16x32xf32>
    %cst = arith.constant dense<0.000000e+00> : vector<16xf32>
    %1 = vector.multi_reduction <add>, %0, %cst [1] : vector<16x32xf32> to vector<16xf32>
    %2 = vector.shape_cast %1 : vector<16xf32> to vector<16x1xf32>
    %cst_1 = arith.constant 3.200000e+01 : f32
    %3 = vector.broadcast %cst_1 : f32 to vector<16x1xf32>
    %4 = arith.divf %2, %3 : vector<16x1xf32>
    %5 = vector.broadcast %4 : vector<16x1xf32> to vector<16x32xf32>
    %6 = arith.subf %0, %5 : vector<16x32xf32>
    %7 = arith.mulf %6, %6 : vector<16x32xf32>
    %cst_2 = arith.constant dense<0.000000e+00> : vector<16xf32>
    %8 = vector.multi_reduction <add>, %7, %cst_2 [1] : vector<16x32xf32> to vector<16xf32>
    %9 = vector.shape_cast %8 : vector<16xf32> to vector<16x1xf32>
    %cst_3 = arith.constant 3.200000e+01 : f32
    %10 = vector.broadcast %cst_3 : f32 to vector<16x1xf32>
    %11 = arith.divf %9, %10 : vector<16x1xf32>
    %12 = vector.broadcast %4 : vector<16x1xf32> to vector<16x32xf32>
    %13 = arith.subf %0, %12 : vector<16x32xf32>
    %cst_4 = arith.constant 9.99999974E-6 : f32
    %14 = vector.broadcast %cst_4 : f32 to vector<16x1xf32>
    %15 = arith.addf %11, %14 : vector<16x1xf32>
    %16 = math.rsqrt %15 : vector<16x1xf32>
    %17 = vector.broadcast %16 : vector<16x1xf32> to vector<16x32xf32>
    %18 = arith.mulf %13, %17 : vector<16x32xf32>
    %c0_5 = arith.constant 0 : index
    %c0_6 = arith.constant 0 : index
    %19 = vector.load %arg3[%c0_5, %c0_6] : memref<1x32xf32, #tpu.memory_space<vmem>>, vector<1x32xf32>
    %20 = vector.broadcast %19 : vector<1x32xf32> to vector<16x32xf32>
    %21 = arith.mulf %18, %20 : vector<16x32xf32>
    %c0_7 = arith.constant 0 : index
    %c0_8 = arith.constant 0 : index
    %22 = vector.load %arg4[%c0_7, %c0_8] : memref<1x32xf32, #tpu.memory_space<vmem>>, vector<1x32xf32>
    %23 = vector.broadcast %22 : vector<1x32xf32> to vector<16x32xf32>
    %24 = arith.addf %21, %23 : vector<16x32xf32>
    %c0_9 = arith.constant 0 : index
    %c0_10 = arith.constant 0 : index
    %25 = vector.load %arg5[%c0_9, %c0_10] : memref<32x128xf32, #tpu.memory_space<vmem>>, vector<32x128xf32>
    %cst_11 = arith.constant dense<0.000000e+00> : vector<16x128xf32>
    %26 = tpu.matmul %24, %25, %cst_11 {dimension_numbers = #tpu.dot_dimension_numbers<[1], [0], [0], [1], [0, 0, 1, 1], [], []>} : vector<16x32xf32>, vector<32x128xf32>, vector<16x128xf32> -> vector<16x128xf32>
    %c0_12 = arith.constant 0 : index
    %c0_13 = arith.constant 0 : index
    %27 = vector.load %arg6[%c0_12, %c0_13] : memref<1x128xf32, #tpu.memory_space<vmem>>, vector<1x128xf32>
    %28 = vector.broadcast %27 : vector<1x128xf32> to vector<16x128xf32>
    %29 = arith.addf %26, %28 : vector<16x128xf32>
    %c0_14 = arith.constant 0 : index
    %c0_15 = arith.constant 0 : index
    %30 = vector.load %arg7[%c0_14, %c0_15] : memref<32x128xf32, #tpu.memory_space<vmem>>, vector<32x128xf32>
    %cst_16 = arith.constant dense<0.000000e+00> : vector<16x128xf32>
    %31 = tpu.matmul %24, %30, %cst_16 {dimension_numbers = #tpu.dot_dimension_numbers<[1], [0], [0], [1], [0, 0, 1, 1], [], []>} : vector<16x32xf32>, vector<32x128xf32>, vector<16x128xf32> -> vector<16x128xf32>
    %c0_17 = arith.constant 0 : index
    %c0_18 = arith.constant 0 : index
    %32 = vector.load %arg8[%c0_17, %c0_18] : memref<1x128xf32, #tpu.memory_space<vmem>>, vector<1x128xf32>
    %33 = vector.broadcast %32 : vector<1x128xf32> to vector<16x128xf32>
    %34 = arith.addf %31, %33 : vector<16x128xf32>
    %cst_19 = arith.constant 5.000000e-01 : f32
    %35 = vector.broadcast %cst_19 : f32 to vector<16x128xf32>
    %36 = arith.mulf %35, %34 : vector<16x128xf32>
    %cst_20 = arith.constant 0.707106769 : f32
    %37 = vector.broadcast %cst_20 : f32 to vector<16x128xf32>
    %38 = arith.mulf %34, %37 : vector<16x128xf32>
    %cst_21 = arith.constant 0.000000e+00 : f32
    %39 = vector.broadcast %cst_21 : f32 to vector<16x128xf32>
    %40 = arith.cmpf oge, %38, %39 : vector<16x128xf32>
    %cst_22 = arith.constant 1.000000e+00 : f32
    %cst_23 = arith.constant -1.000000e+00 : f32
    %41 = vector.broadcast %cst_22 : f32 to vector<16x128xf32>
    %42 = vector.broadcast %cst_23 : f32 to vector<16x128xf32>
    %43 = arith.select %40, %41, %42 : vector<16x128xi1>, vector<16x128xf32>
    %44 = math.absf %38 : vector<16x128xf32>
    %cst_24 = arith.constant 0.327591091 : f32
    %45 = vector.broadcast %cst_24 : f32 to vector<16x128xf32>
    %46 = arith.mulf %45, %44 : vector<16x128xf32>
    %cst_25 = arith.constant 1.000000e+00 : f32
    %47 = vector.broadcast %cst_25 : f32 to vector<16x128xf32>
    %48 = arith.addf %47, %46 : vector<16x128xf32>
    %cst_26 = arith.constant 1.000000e+00 : f32
    %49 = vector.broadcast %cst_26 : f32 to vector<16x128xf32>
    %50 = arith.divf %49, %48 : vector<16x128xf32>
    %cst_27 = arith.constant 1.06140542 : f32
    %51 = vector.broadcast %cst_27 : f32 to vector<16x128xf32>
    %52 = arith.mulf %51, %50 : vector<16x128xf32>
    %cst_28 = arith.constant -1.45315206 : f32
    %53 = vector.broadcast %cst_28 : f32 to vector<16x128xf32>
    %54 = arith.addf %52, %53 : vector<16x128xf32>
    %55 = arith.mulf %54, %50 : vector<16x128xf32>
    %cst_29 = arith.constant 1.42141378 : f32
    %56 = vector.broadcast %cst_29 : f32 to vector<16x128xf32>
    %57 = arith.addf %55, %56 : vector<16x128xf32>
    %58 = arith.mulf %57, %50 : vector<16x128xf32>
    %cst_30 = arith.constant -0.284496725 : f32
    %59 = vector.broadcast %cst_30 : f32 to vector<16x128xf32>
    %60 = arith.addf %58, %59 : vector<16x128xf32>
    %61 = arith.mulf %60, %50 : vector<16x128xf32>
    %cst_31 = arith.constant 0.254829586 : f32
    %62 = vector.broadcast %cst_31 : f32 to vector<16x128xf32>
    %63 = arith.addf %61, %62 : vector<16x128xf32>
    %64 = arith.mulf %63, %50 : vector<16x128xf32>
    %cst_32 = arith.constant 0.000000e+00 : f32
    %65 = vector.broadcast %cst_32 : f32 to vector<16x128xf32>
    %66 = arith.subf %65, %44 : vector<16x128xf32>
    %67 = arith.mulf %66, %44 : vector<16x128xf32>
    %68 = math.exp %67 : vector<16x128xf32>
    %69 = arith.mulf %64, %68 : vector<16x128xf32>
    %cst_33 = arith.constant 1.000000e+00 : f32
    %70 = vector.broadcast %cst_33 : f32 to vector<16x128xf32>
    %71 = arith.subf %70, %69 : vector<16x128xf32>
    %72 = arith.mulf %43, %71 : vector<16x128xf32>
    %cst_34 = arith.constant 1.000000e+00 : f32
    %73 = vector.broadcast %cst_34 : f32 to vector<16x128xf32>
    %74 = arith.addf %73, %72 : vector<16x128xf32>
    %75 = arith.mulf %36, %74 : vector<16x128xf32>
    %76 = arith.mulf %29, %75 : vector<16x128xf32>
    %c0_35 = arith.constant 0 : index
    %c0_36 = arith.constant 0 : index
    %77 = vector.load %arg9[%c0_35, %c0_36] : memref<16x128xf32, #tpu.memory_space<vmem>>, vector<16x128xf32>
    tpu.vector_store %arg9[%c0_35, %c0_36], %76 {strides = array<i32>} : memref<16x128xf32, #tpu.memory_space<vmem>>, vector<16x128xf32>,
    return
  }
  func.func @transform_0(%arg0: i32, %arg1: i32) -> (i32, i32) {
    %c0_i32 = arith.constant 0 : i32
    %c0_i32_0 = arith.constant 0 : i32
    return %arg0, %c0_i32 : i32, i32
  }
  func.func @transform_1(%arg0: i32, %arg1: i32) -> (i32, i32) {
    %c0_i32 = arith.constant 0 : i32
    %c0_i32_0 = arith.constant 0 : i32
    %c0_i32_1 = arith.constant 0 : i32
    return %c0_i32, %c0_i32_0 : i32, i32
  }
  func.func @transform_2(%arg0: i32, %arg1: i32) -> (i32, i32) {
    %c0_i32 = arith.constant 0 : i32
    %c0_i32_0 = arith.constant 0 : i32
    %c0_i32_1 = arith.constant 0 : i32
    return %c0_i32, %c0_i32_0 : i32, i32
  }
  func.func @transform_3(%arg0: i32, %arg1: i32) -> (i32, i32) {
    %c0_i32 = arith.constant 0 : i32
    %c0_i32_0 = arith.constant 0 : i32
    return %c0_i32, %arg1 : i32, i32
  }
  func.func @transform_4(%arg0: i32, %arg1: i32) -> (i32, i32) {
    %c0_i32 = arith.constant 0 : i32
    %c0_i32_0 = arith.constant 0 : i32
    return %c0_i32, %arg1 : i32, i32
  }
  func.func @transform_5(%arg0: i32, %arg1: i32) -> (i32, i32) {
    %c0_i32 = arith.constant 0 : i32
    %c0_i32_0 = arith.constant 0 : i32
    return %c0_i32, %arg1 : i32, i32
  }
  func.func @transform_6(%arg0: i32, %arg1: i32) -> (i32, i32) {
    %c0_i32 = arith.constant 0 : i32
    %c0_i32_0 = arith.constant 0 : i32
    return %c0_i32, %arg1 : i32, i32
  }
  func.func @transform_7(%arg0: i32, %arg1: i32) -> (i32, i32) {
    %c0_i32 = arith.constant 0 : i32
    return %arg0, %arg1 : i32, i32
  }
}

module attributes {stable_mosaic.version = 11 : i64} {
  func.func @kernel(%arg0: i32, %arg1: i32, %arg2: memref<16x128xf32, #tpu.memory_space<vmem>>, %arg3: memref<128x32xf32, #tpu.memory_space<vmem>>, %arg4: memref<1x32xf32, #tpu.memory_space<vmem>>, %arg5: memref<16x32xf32, #tpu.memory_space<vmem>>, %arg6: memref<16x32xf32, #tpu.memory_space<vmem>>) attributes {dimension_semantics = [#tpu.dimension_semantics<parallel>, #tpu.dimension_semantics<parallel>], iteration_bounds = array<i64: 1, 1>, scalar_prefetch = 0 : i64, scratch_operands = 0 : i64, tpu.core_type = #tpu.core_type<tc>, window_params = [{transform_indices = @transform_0, window_bounds = array<i64: 16, 128>}, {transform_indices = @transform_1, window_bounds = array<i64: 128, 32>}, {transform_indices = @transform_2, window_bounds = array<i64: 1, 32>}, {transform_indices = @transform_3, window_bounds = array<i64: 16, 32>}, {transform_indices = @transform_4, window_bounds = array<i64: 16, 32>}]} {
    %c0 = arith.constant 0 : index
    %c0_0 = arith.constant 0 : index
    %0 = vector.load %arg2[%c0, %c0_0] : memref<16x128xf32, #tpu.memory_space<vmem>>, vector<16x128xf32>
    %c0_1 = arith.constant 0 : index
    %c0_2 = arith.constant 0 : index
    %1 = vector.load %arg3[%c0_1, %c0_2] : memref<128x32xf32, #tpu.memory_space<vmem>>, vector<128x32xf32>
    %cst = arith.constant dense<0.000000e+00> : vector<16x32xf32>
    %2 = tpu.matmul %0, %1, %cst {dimension_numbers = #tpu.dot_dimension_numbers<[1], [0], [0], [1], [0, 0, 1, 1], [], []>} : vector<16x128xf32>, vector<128x32xf32>, vector<16x32xf32> -> vector<16x32xf32>
    %c0_3 = arith.constant 0 : index
    %c0_4 = arith.constant 0 : index
    %3 = vector.load %arg4[%c0_3, %c0_4] : memref<1x32xf32, #tpu.memory_space<vmem>>, vector<1x32xf32>
    %4 = vector.broadcast %3 : vector<1x32xf32> to vector<16x32xf32>
    %5 = arith.addf %2, %4 : vector<16x32xf32>
    %c0_5 = arith.constant 0 : index
    %c0_6 = arith.constant 0 : index
    %6 = vector.load %arg5[%c0_5, %c0_6] : memref<16x32xf32, #tpu.memory_space<vmem>>, vector<16x32xf32>
    %7 = arith.addf %5, %6 : vector<16x32xf32>
    %c0_7 = arith.constant 0 : index
    %c0_8 = arith.constant 0 : index
    %8 = vector.load %arg6[%c0_7, %c0_8] : memref<16x32xf32, #tpu.memory_space<vmem>>, vector<16x32xf32>
    tpu.vector_store %arg6[%c0_7, %c0_8], %7 {strides = array<i32>} : memref<16x32xf32, #tpu.memory_space<vmem>>, vector<16x32xf32>,
    return
  }
  func.func @transform_0(%arg0: i32, %arg1: i32) -> (i32, i32) {
    %c0_i32 = arith.constant 0 : i32
    %c0_i32_0 = arith.constant 0 : i32
    return %arg0, %c0_i32 : i32, i32
  }
  func.func @transform_1(%arg0: i32, %arg1: i32) -> (i32, i32) {
    %c0_i32 = arith.constant 0 : i32
    %c0_i32_0 = arith.constant 0 : i32
    return %c0_i32, %arg1 : i32, i32
  }
  func.func @transform_2(%arg0: i32, %arg1: i32) -> (i32, i32) {
    %c0_i32 = arith.constant 0 : i32
    %c0_i32_0 = arith.constant 0 : i32
    return %c0_i32, %arg1 : i32, i32
  }
  func.func @transform_3(%arg0: i32, %arg1: i32) -> (i32, i32) {
    %c0_i32 = arith.constant 0 : i32
    return %arg0, %arg1 : i32, i32
  }
  func.func @transform_4(%arg0: i32, %arg1: i32) -> (i32, i32) {
    %c0_i32 = arith.constant 0 : i32
    return %arg0, %arg1 : i32, i32
  }
}

module attributes {stable_mosaic.version = 11 : i64} {
  func.func @kernel(%arg0: i32, %arg1: i32, %arg2: memref<16x32xf32, #tpu.memory_space<vmem>>, %arg3: memref<1x32xf32, #tpu.memory_space<vmem>>, %arg4: memref<1x32xf32, #tpu.memory_space<vmem>>, %arg5: memref<32x96xf32, #tpu.memory_space<vmem>>, %arg6: memref<1x96xf32, #tpu.memory_space<vmem>>, %arg7: memref<16x96xf32, #tpu.memory_space<vmem>>) attributes {dimension_semantics = [#tpu.dimension_semantics<parallel>, #tpu.dimension_semantics<parallel>], iteration_bounds = array<i64: 1, 1>, scalar_prefetch = 0 : i64, scratch_operands = 0 : i64, tpu.core_type = #tpu.core_type<tc>, window_params = [{transform_indices = @transform_0, window_bounds = array<i64: 16, 32>}, {pipeline_mode = #tpu.pipeline_mode<synchronous>, transform_indices = @transform_1, window_bounds = array<i64: 1, 32>}, {pipeline_mode = #tpu.pipeline_mode<synchronous>, transform_indices = @transform_2, window_bounds = array<i64: 1, 32>}, {transform_indices = @transform_3, window_bounds = array<i64: 32, 96>}, {transform_indices = @transform_4, window_bounds = array<i64: 1, 96>}, {transform_indices = @transform_5, window_bounds = array<i64: 16, 96>}]} {
    %c0 = arith.constant 0 : index
    %c0_0 = arith.constant 0 : index
    %0 = vector.load %arg2[%c0, %c0_0] : memref<16x32xf32, #tpu.memory_space<vmem>>, vector<16x32xf32>
    %cst = arith.constant dense<0.000000e+00> : vector<16xf32>
    %1 = vector.multi_reduction <add>, %0, %cst [1] : vector<16x32xf32> to vector<16xf32>
    %2 = vector.shape_cast %1 : vector<16xf32> to vector<16x1xf32>
    %cst_1 = arith.constant 3.200000e+01 : f32
    %3 = vector.broadcast %cst_1 : f32 to vector<16x1xf32>
    %4 = arith.divf %2, %3 : vector<16x1xf32>
    %5 = vector.broadcast %4 : vector<16x1xf32> to vector<16x32xf32>
    %6 = arith.subf %0, %5 : vector<16x32xf32>
    %7 = arith.mulf %6, %6 : vector<16x32xf32>
    %cst_2 = arith.constant dense<0.000000e+00> : vector<16xf32>
    %8 = vector.multi_reduction <add>, %7, %cst_2 [1] : vector<16x32xf32> to vector<16xf32>
    %9 = vector.shape_cast %8 : vector<16xf32> to vector<16x1xf32>
    %cst_3 = arith.constant 3.200000e+01 : f32
    %10 = vector.broadcast %cst_3 : f32 to vector<16x1xf32>
    %11 = arith.divf %9, %10 : vector<16x1xf32>
    %12 = vector.broadcast %4 : vector<16x1xf32> to vector<16x32xf32>
    %13 = arith.subf %0, %12 : vector<16x32xf32>
    %cst_4 = arith.constant 9.99999974E-6 : f32
    %14 = vector.broadcast %cst_4 : f32 to vector<16x1xf32>
    %15 = arith.addf %11, %14 : vector<16x1xf32>
    %16 = math.rsqrt %15 : vector<16x1xf32>
    %17 = vector.broadcast %16 : vector<16x1xf32> to vector<16x32xf32>
    %18 = arith.mulf %13, %17 : vector<16x32xf32>
    %c0_5 = arith.constant 0 : index
    %c0_6 = arith.constant 0 : index
    %19 = vector.load %arg3[%c0_5, %c0_6] : memref<1x32xf32, #tpu.memory_space<vmem>>, vector<1x32xf32>
    %20 = vector.broadcast %19 : vector<1x32xf32> to vector<16x32xf32>
    %21 = arith.mulf %18, %20 : vector<16x32xf32>
    %c0_7 = arith.constant 0 : index
    %c0_8 = arith.constant 0 : index
    %22 = vector.load %arg4[%c0_7, %c0_8] : memref<1x32xf32, #tpu.memory_space<vmem>>, vector<1x32xf32>
    %23 = vector.broadcast %22 : vector<1x32xf32> to vector<16x32xf32>
    %24 = arith.addf %21, %23 : vector<16x32xf32>
    %c0_9 = arith.constant 0 : index
    %c0_10 = arith.constant 0 : index
    %25 = vector.load %arg5[%c0_9, %c0_10] : memref<32x96xf32, #tpu.memory_space<vmem>>, vector<32x96xf32>
    %cst_11 = arith.constant dense<0.000000e+00> : vector<16x96xf32>
    %26 = tpu.matmul %24, %25, %cst_11 {dimension_numbers = #tpu.dot_dimension_numbers<[1], [0], [0], [1], [0, 0, 1, 1], [], []>} : vector<16x32xf32>, vector<32x96xf32>, vector<16x96xf32> -> vector<16x96xf32>
    %c0_12 = arith.constant 0 : index
    %c0_13 = arith.constant 0 : index
    %27 = vector.load %arg6[%c0_12, %c0_13] : memref<1x96xf32, #tpu.memory_space<vmem>>, vector<1x96xf32>
    %28 = vector.broadcast %27 : vector<1x96xf32> to vector<16x96xf32>
    %29 = arith.addf %26, %28 : vector<16x96xf32>
    %c0_14 = arith.constant 0 : index
    %c0_15 = arith.constant 0 : index
    %30 = vector.load %arg7[%c0_14, %c0_15] : memref<16x96xf32, #tpu.memory_space<vmem>>, vector<16x96xf32>
    tpu.vector_store %arg7[%c0_14, %c0_15], %29 {strides = array<i32>} : memref<16x96xf32, #tpu.memory_space<vmem>>, vector<16x96xf32>,
    return
  }
  func.func @transform_0(%arg0: i32, %arg1: i32) -> (i32, i32) {
    %c0_i32 = arith.constant 0 : i32
    %c0_i32_0 = arith.constant 0 : i32
    return %arg0, %c0_i32 : i32, i32
  }
  func.func @transform_1(%arg0: i32, %arg1: i32) -> (i32, i32) {
    %c0_i32 = arith.constant 0 : i32
    %c0_i32_0 = arith.constant 0 : i32
    %c0_i32_1 = arith.constant 0 : i32
    return %c0_i32, %c0_i32_0 : i32, i32
  }
  func.func @transform_2(%arg0: i32, %arg1: i32) -> (i32, i32) {
    %c0_i32 = arith.constant 0 : i32
    %c0_i32_0 = arith.constant 0 : i32
    %c0_i32_1 = arith.constant 0 : i32
    return %c0_i32, %c0_i32_0 : i32, i32
  }
  func.func @transform_3(%arg0: i32, %arg1: i32) -> (i32, i32) {
    %c0_i32 = arith.constant 0 : i32
    %c0_i32_0 = arith.constant 0 : i32
    return %c0_i32, %arg1 : i32, i32
  }
  func.func @transform_4(%arg0: i32, %arg1: i32) -> (i32, i32) {
    %c0_i32 = arith.constant 0 : i32
    %c0_i32_0 = arith.constant 0 : i32
    return %c0_i32, %arg1 : i32, i32
  }
  func.func @transform_5(%arg0: i32, %arg1: i32) -> (i32, i32) {
    %c0_i32 = arith.constant 0 : i32
    return %arg0, %arg1 : i32, i32
  }
}

module attributes {stable_mosaic.version = 11 : i64} {
  func.func @_attention_kernel(%arg0: i32, %arg1: memref<1x8x128xf32, #tpu.memory_space<vmem>>, %arg2: memref<1x8x128xf32, #tpu.memory_space<vmem>>, %arg3: memref<1x8x128xf32, #tpu.memory_space<vmem>>, %arg4: memref<1x8x128xf32, #tpu.memory_space<vmem>>) attributes {dimension_semantics = [#tpu.dimension_semantics<parallel>], iteration_bounds = array<i64: 4>, scalar_prefetch = 0 : i64, scratch_operands = 0 : i64, tpu.core_type = #tpu.core_type<tc>, window_params = [{transform_indices = @transform_0, window_bounds = array<i64: 1, 8, 128>}, {transform_indices = @transform_1, window_bounds = array<i64: 1, 8, 128>}, {transform_indices = @transform_2, window_bounds = array<i64: 1, 8, 128>}, {transform_indices = @transform_3, window_bounds = array<i64: 1, 8, 128>}]} {
    %c0 = arith.constant 0 : index
    %c0_0 = arith.constant 0 : index
    %c0_1 = arith.constant 0 : index
    %0 = vector.load %arg1[%c0, %c0_0, %c0_1] : memref<1x8x128xf32, #tpu.memory_space<vmem>>, vector<1x8x128xf32>
    %1 = vector.shape_cast %0 : vector<1x8x128xf32> to vector<8x128xf32>
    %c0_2 = arith.constant 0 : index
    %c0_3 = arith.constant 0 : index
    %c0_4 = arith.constant 0 : index
    %2 = vector.load %arg2[%c0_2, %c0_3, %c0_4] : memref<1x8x128xf32, #tpu.memory_space<vmem>>, vector<1x8x128xf32>
    %3 = vector.shape_cast %2 : vector<1x8x128xf32> to vector<8x128xf32>
    %c0_5 = arith.constant 0 : index
    %c0_6 = arith.constant 0 : index
    %c0_7 = arith.constant 0 : index
    %4 = vector.load %arg3[%c0_5, %c0_6, %c0_7] : memref<1x8x128xf32, #tpu.memory_space<vmem>>, vector<1x8x128xf32>
    %5 = vector.shape_cast %4 : vector<1x8x128xf32> to vector<8x128xf32>
    %cst = arith.constant dense<0.000000e+00> : vector<8x8xf32>
    %6 = tpu.matmul %1, %3, %cst {dimension_numbers = #tpu.dot_dimension_numbers<[1], [1], [0], [0], [0, 0, 1, 0], [], []>} : vector<8x128xf32>, vector<8x128xf32>, vector<8x8xf32> -> vector<8x8xf32>
    %cst_8 = arith.constant 2.500000e-01 : f32
    %7 = vector.broadcast %cst_8 : f32 to vector<8x8xf32>
    %8 = arith.mulf %6, %7 : vector<8x8xf32>
    %cst_9 = arith.constant dense<0xFF800000> : vector<8xf32>
    %9 = vector.multi_reduction <maximumf>, %8, %cst_9 [1] : vector<8x8xf32> to vector<8xf32>
    %10 = vector.shape_cast %9 : vector<8xf32> to vector<8x1xf32>
    %11 = vector.broadcast %10 : vector<8x1xf32> to vector<8x8xf32>
    %12 = arith.subf %8, %11 : vector<8x8xf32>
    %13 = math.exp %12 : vector<8x8xf32>
    %cst_10 = arith.constant dense<0.000000e+00> : vector<8xf32>
    %14 = vector.multi_reduction <add>, %13, %cst_10 [1] : vector<8x8xf32> to vector<8xf32>
    %15 = vector.shape_cast %14 : vector<8xf32> to vector<8x1xf32>
    %16 = tpu.reciprocal %15 {approx = true} : vector<8x1xf32> -> vector<8x1xf32>
    %17 = arith.mulf %15, %16 : vector<8x1xf32>
    %cst_11 = arith.constant 2.000000e+00 : f32
    %18 = vector.broadcast %cst_11 : f32 to vector<8x1xf32>
    %19 = arith.subf %18, %17 : vector<8x1xf32>
    %20 = arith.mulf %16, %19 : vector<8x1xf32>
    %21 = vector.broadcast %20 : vector<8x1xf32> to vector<8x8xf32>
    %22 = arith.mulf %13, %21 : vector<8x8xf32>
    %cst_12 = arith.constant dense<0.000000e+00> : vector<8x128xf32>
    %23 = tpu.matmul %22, %5, %cst_12 {dimension_numbers = #tpu.dot_dimension_numbers<[1], [0], [0], [1], [0, 0, 1, 1], [], []>} : vector<8x8xf32>, vector<8x128xf32>, vector<8x128xf32> -> vector<8x128xf32>
    %c0_13 = arith.constant 0 : index
    %c0_14 = arith.constant 0 : index
    %c0_15 = arith.constant 0 : index
    %24 = vector.load %arg4[%c0_13, %c0_14, %c0_15] : memref<1x8x128xf32, #tpu.memory_space<vmem>>, vector<1x8x128xf32>
    %25 = vector.shape_cast %24 : vector<1x8x128xf32> to vector<8x128xf32>
    %26 = vector.shape_cast %23 : vector<8x128xf32> to vector<1x8x128xf32>
    tpu.vector_store %arg4[%c0_13, %c0_14, %c0_15], %26 {strides = array<i32>} : memref<1x8x128xf32, #tpu.memory_space<vmem>>, vector<1x8x128xf32>,
    return
  }
  func.func @transform_0(%arg0: i32) -> (i32, i32, i32) {
    %c0_i32 = arith.constant 0 : i32
    %c0_i32_0 = arith.constant 0 : i32
    %c0_i32_1 = arith.constant 0 : i32
    return %arg0, %c0_i32, %c0_i32_0 : i32, i32, i32
  }
  func.func @transform_1(%arg0: i32) -> (i32, i32, i32) {
    %c0_i32 = arith.constant 0 : i32
    %c0_i32_0 = arith.constant 0 : i32
    %c0_i32_1 = arith.constant 0 : i32
    return %arg0, %c0_i32, %c0_i32_0 : i32, i32, i32
  }
  func.func @transform_2(%arg0: i32) -> (i32, i32, i32) {
    %c0_i32 = arith.constant 0 : i32
    %c0_i32_0 = arith.constant 0 : i32
    %c0_i32_1 = arith.constant 0 : i32
    return %arg0, %c0_i32, %c0_i32_0 : i32, i32, i32
  }
  func.func @transform_3(%arg0: i32) -> (i32, i32, i32) {
    %c0_i32 = arith.constant 0 : i32
    %c0_i32_0 = arith.constant 0 : i32
    %c0_i32_1 = arith.constant 0 : i32
    return %arg0, %c0_i32, %c0_i32_0 : i32, i32, i32
  }
}

module attributes {stable_mosaic.version = 11 : i64} {
  func.func @kernel(%arg0: i32, %arg1: i32, %arg2: memref<16x32xf32, #tpu.memory_space<vmem>>, %arg3: memref<32x32xf32, #tpu.memory_space<vmem>>, %arg4: memref<1x32xf32, #tpu.memory_space<vmem>>, %arg5: memref<16x32xf32, #tpu.memory_space<vmem>>, %arg6: memref<16x32xf32, #tpu.memory_space<vmem>>) attributes {dimension_semantics = [#tpu.dimension_semantics<parallel>, #tpu.dimension_semantics<parallel>], iteration_bounds = array<i64: 1, 1>, scalar_prefetch = 0 : i64, scratch_operands = 0 : i64, tpu.core_type = #tpu.core_type<tc>, window_params = [{transform_indices = @transform_0, window_bounds = array<i64: 16, 32>}, {transform_indices = @transform_1, window_bounds = array<i64: 32, 32>}, {transform_indices = @transform_2, window_bounds = array<i64: 1, 32>}, {transform_indices = @transform_3, window_bounds = array<i64: 16, 32>}, {transform_indices = @transform_4, window_bounds = array<i64: 16, 32>}]} {
    %c0 = arith.constant 0 : index
    %c0_0 = arith.constant 0 : index
    %0 = vector.load %arg2[%c0, %c0_0] : memref<16x32xf32, #tpu.memory_space<vmem>>, vector<16x32xf32>
    %c0_1 = arith.constant 0 : index
    %c0_2 = arith.constant 0 : index
    %1 = vector.load %arg3[%c0_1, %c0_2] : memref<32x32xf32, #tpu.memory_space<vmem>>, vector<32x32xf32>
    %cst = arith.constant dense<0.000000e+00> : vector<16x32xf32>
    %2 = tpu.matmul %0, %1, %cst {dimension_numbers = #tpu.dot_dimension_numbers<[1], [0], [0], [1], [0, 0, 1, 1], [], []>} : vector<16x32xf32>, vector<32x32xf32>, vector<16x32xf32> -> vector<16x32xf32>
    %c0_3 = arith.constant 0 : index
    %c0_4 = arith.constant 0 : index
    %3 = vector.load %arg4[%c0_3, %c0_4] : memref<1x32xf32, #tpu.memory_space<vmem>>, vector<1x32xf32>
    %4 = vector.broadcast %3 : vector<1x32xf32> to vector<16x32xf32>
    %5 = arith.addf %2, %4 : vector<16x32xf32>
    %c0_5 = arith.constant 0 : index
    %c0_6 = arith.constant 0 : index
    %6 = vector.load %arg5[%c0_5, %c0_6] : memref<16x32xf32, #tpu.memory_space<vmem>>, vector<16x32xf32>
    %7 = arith.addf %5, %6 : vector<16x32xf32>
    %c0_7 = arith.constant 0 : index
    %c0_8 = arith.constant 0 : index
    %8 = vector.load %arg6[%c0_7, %c0_8] : memref<16x32xf32, #tpu.memory_space<vmem>>, vector<16x32xf32>
    tpu.vector_store %arg6[%c0_7, %c0_8], %7 {strides = array<i32>} : memref<16x32xf32, #tpu.memory_space<vmem>>, vector<16x32xf32>,
    return
  }
  func.func @transform_0(%arg0: i32, %arg1: i32) -> (i32, i32) {
    %c0_i32 = arith.constant 0 : i32
    %c0_i32_0 = arith.constant 0 : i32
    return %arg0, %c0_i32 : i32, i32
  }
  func.func @transform_1(%arg0: i32, %arg1: i32) -> (i32, i32) {
    %c0_i32 = arith.constant 0 : i32
    %c0_i32_0 = arith.constant 0 : i32
    return %c0_i32, %arg1 : i32, i32
  }
  func.func @transform_2(%arg0: i32, %arg1: i32) -> (i32, i32) {
    %c0_i32 = arith.constant 0 : i32
    %c0_i32_0 = arith.constant 0 : i32
    return %c0_i32, %arg1 : i32, i32
  }
  func.func @transform_3(%arg0: i32, %arg1: i32) -> (i32, i32) {
    %c0_i32 = arith.constant 0 : i32
    return %arg0, %arg1 : i32, i32
  }
  func.func @transform_4(%arg0: i32, %arg1: i32) -> (i32, i32) {
    %c0_i32 = arith.constant 0 : i32
    return %arg0, %arg1 : i32, i32
  }
}

module attributes {stable_mosaic.version = 11 : i64} {
  func.func @kernel(%arg0: i32, %arg1: i32, %arg2: memref<16x16xf32, #tpu.memory_space<vmem>>, %arg3: memref<16x32xf32, #tpu.memory_space<vmem>>, %arg4: memref<1x32xf32, #tpu.memory_space<vmem>>, %arg5: memref<16x32xf32, #tpu.memory_space<vmem>>) attributes {dimension_semantics = [#tpu.dimension_semantics<parallel>, #tpu.dimension_semantics<parallel>], iteration_bounds = array<i64: 1, 1>, scalar_prefetch = 0 : i64, scratch_operands = 0 : i64, tpu.core_type = #tpu.core_type<tc>, window_params = [{transform_indices = @transform_0, window_bounds = array<i64: 16, 16>}, {transform_indices = @transform_1, window_bounds = array<i64: 16, 32>}, {transform_indices = @transform_2, window_bounds = array<i64: 1, 32>}, {transform_indices = @transform_3, window_bounds = array<i64: 16, 32>}]} {
    %c0 = arith.constant 0 : index
    %c0_0 = arith.constant 0 : index
    %0 = vector.load %arg2[%c0, %c0_0] : memref<16x16xf32, #tpu.memory_space<vmem>>, vector<16x16xf32>
    %c0_1 = arith.constant 0 : index
    %c0_2 = arith.constant 0 : index
    %1 = vector.load %arg3[%c0_1, %c0_2] : memref<16x32xf32, #tpu.memory_space<vmem>>, vector<16x32xf32>
    %cst = arith.constant dense<0.000000e+00> : vector<16x32xf32>
    %2 = tpu.matmul %0, %1, %cst {dimension_numbers = #tpu.dot_dimension_numbers<[1], [0], [0], [1], [0, 0, 1, 1], [], []>} : vector<16x16xf32>, vector<16x32xf32>, vector<16x32xf32> -> vector<16x32xf32>
    %c0_3 = arith.constant 0 : index
    %c0_4 = arith.constant 0 : index
    %3 = vector.load %arg4[%c0_3, %c0_4] : memref<1x32xf32, #tpu.memory_space<vmem>>, vector<1x32xf32>
    %4 = vector.broadcast %3 : vector<1x32xf32> to vector<16x32xf32>
    %5 = arith.addf %2, %4 : vector<16x32xf32>
    %c0_5 = arith.constant 0 : index
    %c0_6 = arith.constant 0 : index
    %6 = vector.load %arg5[%c0_5, %c0_6] : memref<16x32xf32, #tpu.memory_space<vmem>>, vector<16x32xf32>
    tpu.vector_store %arg5[%c0_5, %c0_6], %5 {strides = array<i32>} : memref<16x32xf32, #tpu.memory_space<vmem>>, vector<16x32xf32>,
    return
  }
  func.func @transform_0(%arg0: i32, %arg1: i32) -> (i32, i32) {
    %c0_i32 = arith.constant 0 : i32
    %c0_i32_0 = arith.constant 0 : i32
    return %arg0, %c0_i32 : i32, i32
  }
  func.func @transform_1(%arg0: i32, %arg1: i32) -> (i32, i32) {
    %c0_i32 = arith.constant 0 : i32
    %c0_i32_0 = arith.constant 0 : i32
    return %c0_i32, %arg1 : i32, i32
  }
  func.func @transform_2(%arg0: i32, %arg1: i32) -> (i32, i32) {
    %c0_i32 = arith.constant 0 : i32
    %c0_i32_0 = arith.constant 0 : i32
    return %c0_i32, %arg1 : i32, i32
  }
  func.func @transform_3(%arg0: i32, %arg1: i32) -> (i32, i32) {
    %c0_i32 = arith.constant 0 : i32
    return %arg0, %arg1 : i32, i32
  }
}

module attributes {stable_mosaic.version = 11 : i64} {
  func.func @kernel(%arg0: i32, %arg1: i32, %arg2: memref<16x32xf32, #tpu.memory_space<vmem>>, %arg3: memref<32x64xf32, #tpu.memory_space<vmem>>, %arg4: memref<1x64xf32, #tpu.memory_space<vmem>>, %arg5: memref<16x64xf32, #tpu.memory_space<vmem>>) attributes {dimension_semantics = [#tpu.dimension_semantics<parallel>, #tpu.dimension_semantics<parallel>], iteration_bounds = array<i64: 1, 1>, scalar_prefetch = 0 : i64, scratch_operands = 0 : i64, tpu.core_type = #tpu.core_type<tc>, window_params = [{transform_indices = @transform_0, window_bounds = array<i64: 16, 32>}, {transform_indices = @transform_1, window_bounds = array<i64: 32, 64>}, {transform_indices = @transform_2, window_bounds = array<i64: 1, 64>}, {transform_indices = @transform_3, window_bounds = array<i64: 16, 64>}]} {
    %c0 = arith.constant 0 : index
    %c0_0 = arith.constant 0 : index
    %0 = vector.load %arg2[%c0, %c0_0] : memref<16x32xf32, #tpu.memory_space<vmem>>, vector<16x32xf32>
    %c0_1 = arith.constant 0 : index
    %c0_2 = arith.constant 0 : index
    %1 = vector.load %arg3[%c0_1, %c0_2] : memref<32x64xf32, #tpu.memory_space<vmem>>, vector<32x64xf32>
    %cst = arith.constant dense<0.000000e+00> : vector<16x64xf32>
    %2 = tpu.matmul %0, %1, %cst {dimension_numbers = #tpu.dot_dimension_numbers<[1], [0], [0], [1], [0, 0, 1, 1], [], []>} : vector<16x32xf32>, vector<32x64xf32>, vector<16x64xf32> -> vector<16x64xf32>
    %c0_3 = arith.constant 0 : index
    %c0_4 = arith.constant 0 : index
    %3 = vector.load %arg4[%c0_3, %c0_4] : memref<1x64xf32, #tpu.memory_space<vmem>>, vector<1x64xf32>
    %4 = vector.broadcast %3 : vector<1x64xf32> to vector<16x64xf32>
    %5 = arith.addf %2, %4 : vector<16x64xf32>
    %c0_5 = arith.constant 0 : index
    %c0_6 = arith.constant 0 : index
    %6 = vector.load %arg5[%c0_5, %c0_6] : memref<16x64xf32, #tpu.memory_space<vmem>>, vector<16x64xf32>
    tpu.vector_store %arg5[%c0_5, %c0_6], %5 {strides = array<i32>} : memref<16x64xf32, #tpu.memory_space<vmem>>, vector<16x64xf32>,
    return
  }
  func.func @transform_0(%arg0: i32, %arg1: i32) -> (i32, i32) {
    %c0_i32 = arith.constant 0 : i32
    %c0_i32_0 = arith.constant 0 : i32
    return %arg0, %c0_i32 : i32, i32
  }
  func.func @transform_1(%arg0: i32, %arg1: i32) -> (i32, i32) {
    %c0_i32 = arith.constant 0 : i32
    %c0_i32_0 = arith.constant 0 : i32
    return %c0_i32, %arg1 : i32, i32
  }
  func.func @transform_2(%arg0: i32, %arg1: i32) -> (i32, i32) {
    %c0_i32 = arith.constant 0 : i32
    %c0_i32_0 = arith.constant 0 : i32
    return %c0_i32, %arg1 : i32, i32
  }
  func.func @transform_3(%arg0: i32, %arg1: i32) -> (i32, i32) {
    %c0_i32 = arith.constant 0 : i32
    return %arg0, %arg1 : i32, i32
  }
}

</mosaic_0001>

<bundles_post_ra>
// kernel: ro_perceiver_lm.24
= control target key start
LH: loop header
LB: loop body
LE: loop exit
PB: predicated region body
PF: predicated region fallthrough
CT: control target
= control target key end

     0   :  { %vm22_vm0 = vcmask 261120   ;;  %v145_v4 = vmov 32.0   ;;  %s217_s0 = inlined_call_operand.vmem [shape: f32[16,32], index: 0, kind: input, shape index: {}]   ;;  %s218_s1 = inlined_call_operand.vmem [shape: f32[1,32], index: 1, kind: input, shape index: {}]   ;;  %s219_s2 = inlined_call_operand.vmem [shape: f32[1,32], index: 2, kind: input, shape index: {}]   ;;  %s220_s4 = inlined_call_operand.vmem [shape: f32[1,32], index: 4, kind: input, shape index: {}]   ;;  %s221_s3 = inlined_call_operand.vmem [shape: f32[32,32], index: 3, kind: input, shape index: {}]   ;;  %s222_s5 = inlined_call_operand.vmem [shape: f32[16,32], index: 5, kind: output, shape index: {}]  }
   0x1   :  { %v20_v0 = vld [vmem:[%s217_s0] sm:$0xff]  ;;  %v21_v2 = vld [vmem:[%s217_s0 + $0x8] sm:$0xff]  ;;  %139 = vrcp.f32 %v145_v4  ;;  %v89_v21 = vld [vmem:[%s221_s3 + $0x18] sm:$0xff] }
   0x2   :  { %v23_v1 = vsel %vm22_vm0, %v20_v0, 0.0  ;;  %v26_v3 = vsel %vm22_vm0, %v21_v2, 0.0  ;;  %112 = vmatpush.msra.mxu0 %v89_v21  ;;  %131 = vmatpush.msra.mxu1 %v89_v21  ;;  %v88_v22 = vld [vmem:[%s221_s3 + $0x10] sm:$0xff]  ;;  %v87_v23 = vld [vmem:[%s221_s3 + $0x8] sm:$0xff]  ;;  %v86_v24 = vld [vmem:[%s221_s3] sm:$0xff] }
   0x3   :  { %24 = vadd.xlane.f32.xlu0 %v23_v1  ;;  %v136_v39 = vld [vmem:[%s218_s1] ss:$0 sm:$0xff] }
   0x4   :  { %113 = vmatpush.msra.mxu0 %v88_v22  ;;  %132 = vmatpush.msra.mxu1 %v88_v22  ;;  %v137_v43 = vld [vmem:[%s219_s2] ss:$0 sm:$0xff] }
   0x5   :  { %v138_v53 = vld [vmem:[%s220_s4] ss:$0 sm:$0xff] }
   0x6   :  { %114 = vmatpush.msra.mxu0 %v87_v23  ;;  %133 = vmatpush.msra.mxu1 %v87_v23 }
   0x7   :  { %v140_v5 = vpop.eup %139 }
   0x8   :  { %v30_v6 = vmul.f32 32.0, %v140_v5  ;;  %vm34_vm1 = vweird.f32 %v140_v5  ;;  %115 = vmatpush.msra.mxu0 %v86_v24  ;;  %134 = vmatpush.msra.mxu1 %v86_v24 }
   0xa   :  { %v31_v7 = vsub.f32 1.0, %v30_v6 }
   0xb   :  { %27 = vadd.xlane.f32.xlu0 %v26_v3 }
   0xc   :  { %v32_v8 = vmul.f32 %v140_v5, %v31_v7 }
   0xe   :  { %v33_v9 = vadd.f32 %v140_v5, %v32_v8 }
  0x10   :  { %v35_v10 = vsel %vm34_vm1, %v140_v5, %v33_v9 }
  0x76   :  { %v25_v11 = vpop.xlane.xlu0 %24 }
  0x77   :  { %v36_v12 = vmul.f32 %v35_v10, %v25_v11 }
  0x79   :  { %v38_v13 = vsub.f32 %v20_v0, %v36_v12 }
  0x7b   :  { %v40_v14 = vmul.f32 %v38_v13, %v38_v13 }
  0x7d   :  { %v42_v15 = vsel %vm22_vm0, %v40_v14, 0.0 }
  0x7e   :  { %43 = vadd.xlane.f32.xlu1 %v42_v15  ;;  %v28_v16 = vpop.xlane.xlu0 %27 }
  0x7f   :  { %v37_v17 = vmul.f32 %v35_v10, %v28_v16 }
  0x81   :  { %v39_v18 = vsub.f32 %v21_v2, %v37_v17 }
  0x83   :  { %v41_v19 = vmul.f32 %v39_v18, %v39_v18 }
  0x85   :  { %v45_v20 = vsel %vm22_vm0, %v41_v19, 0.0 }
  0x86   :  { %46 = vadd.xlane.f32.xlu1 %v45_v20 }
  0xf1   :  { %v44_v25 = vpop.xlane.xlu1 %43 }
  0xf2   :  { %v48_v26 = vmul.f32 %v44_v25, %v35_v10 }
  0xf4   :  { %v50_v27 = vadd.f32 1e-05, %v48_v26 }
  0xf6   :  { %141 = vrsqrt.f32 %v50_v27  ;;  %vm58_vm3 = vweird.f32 %v50_v27 }
  0xf9   :  { %v47_v28 = vpop.xlane.xlu1 %46 }
  0xfa   :  { %v49_v29 = vmul.f32 %v47_v28, %v35_v10 }
  0xfc   :  { %v142_v30 = vpop.eup %141  ;;  %v51_v31 = vadd.f32 1e-05, %v49_v29 }
  0xfd   :  { %v53_v32 = vmul.f32 %v142_v30, %v50_v27  ;;  %vm59_vm2 = vweird.f32 %v142_v30 }
  0xfe   :  { %143 = vrsqrt.f32 %v51_v31  ;;  %vm60_vm4 = vmor %vm58_vm3, %vm59_vm2  ;;  %vm68_vm6 = vweird.f32 %v51_v31 }
  0xff   :  { %v54_v33 = vmul.f32 %v142_v30, %v53_v32 }
 0x101   :  { %v55_v34 = vmul.f32 0.5, %v54_v33 }
 0x103   :  { %v56_v35 = vsub.f32 1.5, %v55_v34 }
 0x104   :  { %v144_v36 = vpop.eup %143 }
 0x105   :  { %v57_v37 = vmul.f32 %v142_v30, %v56_v35  ;;  %v63_v38 = vmul.f32 %v144_v36, %v51_v31  ;;  %vm69_vm5 = vweird.f32 %v144_v36 }
 0x106   :  { %vm70_vm7 = vmor %vm68_vm6, %vm69_vm5 }
 0x107   :  { %v61_v40 = vsel %vm60_vm4, %v142_v30, %v57_v37  ;;  %v64_v41 = vmul.f32 %v144_v36, %v63_v38 }
 0x108   :  { %v72_v42 = vmul.f32 %v61_v40, %v38_v13 }
 0x109   :  { %v65_v44 = vmul.f32 0.5, %v64_v41 }
 0x10a   :  { %v78_v45 = vmul.f32 %v136_v39, %v72_v42 }
 0x10b   :  { %v66_v46 = vsub.f32 1.5, %v65_v44 }
 0x10c   :  { %v84_v47 = vadd.f32 %v137_v43, %v78_v45 }
 0x10d   :  { %v67_v48 = vmul.f32 %v144_v36, %v66_v46 }
 0x10e   :  { %129 = vmatmul.msk.f32.vlgmr.msra.gmra.mxu0 %vm22_vm0, %v84_v47 }
 0x10f   :  { %v71_v49 = vsel %vm70_vm7, %v144_v36, %v67_v48 }
 0x110   :  { %v73_v50 = vmul.f32 %v71_v49, %v39_v18 }
 0x112   :  { %v79_v51 = vmul.f32 %v136_v39, %v73_v50 }
 0x114   :  { %v85_v52 = vadd.f32 %v137_v43, %v79_v51 }
 0x116   :  { %130 = vmatmul.msk.f32.vlgmr.msra.gmra.mxu1 %vm22_vm0, %v85_v52 }
 0x18b   :  { %v117_v54 = vpop.f32.mrf.mxu0 }
 0x18c   :  { %v118_v55 = vadd.f32 %v138_v53, %v117_v54 }
 0x18e   :  { %123 = vst.msk [vmem:[%s222_s5] sm:$0xff] %vm22_vm0, %v118_v55 }
 0x193   :  { %v120_v56 = vpop.f32.mrf.mxu1 }
 0x194   :  { %v121_v57 = vadd.f32 %v138_v53, %v120_v56 }
 0x196   :  { %124 = vst.msk [vmem:[%s222_s5 + $0x8] sm:$0xff] %vm22_vm0, %v121_v57 }

// kernel: ro_perceiver_lm.39
= control target key start
LH: loop header
LB: loop body
LE: loop exit
PB: predicated region body
PF: predicated region fallthrough
CT: control target
= control target key end

     0   :  { %vm22_vm0 = vcmask 261120   ;;  %v146_v4 = vmov 32.0   ;;  %vm123_vm8 = vcmask 130048   ;;  %s216_s0 = inlined_call_operand.vmem [shape: f32[16,32], index: 0, kind: input, shape index: {}]   ;;  %s217_s1 = inlined_call_operand.vmem [shape: f32[1,32], index: 1, kind: input, shape index: {}]   ;;  %s218_s2 = inlined_call_operand.vmem [shape: f32[1,32], index: 2, kind: input, shape index: {}]   ;;  %s219_s4 = inlined_call_operand.vmem [shape: f32[1,16], index: 4, kind: input, shape index: {}]   ;;  %s220_s3 = inlined_call_operand.vmem [shape: f32[32,16], index: 3, kind: input, shape index: {}]   ;;  %s221_s5 = inlined_call_operand.vmem [shape: f32[16,16], index: 5, kind: output, shape index: {}]  }
   0x1   :  { %v20_v0 = vld [vmem:[%s216_s0] sm:$0xff]  ;;  %v21_v2 = vld [vmem:[%s216_s0 + $0x8] sm:$0xff]  ;;  %140 = vrcp.f32 %v146_v4  ;;  %v89_v21 = vld [vmem:[%s220_s3 + $0x18] sm:$0xff] }
   0x2   :  { %v23_v1 = vsel %vm22_vm0, %v20_v0, 0.0  ;;  %v26_v3 = vsel %vm22_vm0, %v21_v2, 0.0  ;;  %112 = vmatpush.msra.mxu0 %v89_v21  ;;  %132 = vmatpush.msra.mxu1 %v89_v21  ;;  %v88_v22 = vld [vmem:[%s220_s3 + $0x10] sm:$0xff]  ;;  %v87_v23 = vld [vmem:[%s220_s3 + $0x8] sm:$0xff]  ;;  %v86_v24 = vld [vmem:[%s220_s3] sm:$0xff] }
   0x3   :  { %24 = vadd.xlane.f32.xlu0 %v23_v1  ;;  %v137_v39 = vld [vmem:[%s217_s1] ss:$0 sm:$0xff] }
   0x4   :  { %113 = vmatpush.msra.mxu0 %v88_v22  ;;  %133 = vmatpush.msra.mxu1 %v88_v22  ;;  %v138_v43 = vld [vmem:[%s218_s2] ss:$0 sm:$0xff] }
   0x5   :  { %v139_v53 = vld [vmem:[%s219_s4] ss:$0 sm:$0xff] }
   0x6   :  { %114 = vmatpush.msra.mxu0 %v87_v23  ;;  %134 = vmatpush.msra.mxu1 %v87_v23 }
   0x7   :  { %v141_v5 = vpop.eup %140 }
   0x8   :  { %v30_v6 = vmul.f32 32.0, %v141_v5  ;;  %vm34_vm1 = vweird.f32 %v141_v5  ;;  %115 = vmatpush.msra.mxu0 %v86_v24  ;;  %135 = vmatpush.msra.mxu1 %v86_v24 }
   0xa   :  { %v31_v7 = vsub.f32 1.0, %v30_v6 }
   0xb   :  { %27 = vadd.xlane.f32.xlu0 %v26_v3 }
   0xc   :  { %v32_v8 = vmul.f32 %v141_v5, %v31_v7 }
   0xe   :  { %v33_v9 = vadd.f32 %v141_v5, %v32_v8 }
  0x10   :  { %v35_v10 = vsel %vm34_vm1, %v141_v5, %v33_v9 }
  0x76   :  { %v25_v11 = vpop.xlane.xlu0 %24 }
  0x77   :  { %v36_v12 = vmul.f32 %v35_v10, %v25_v11 }
  0x79   :  { %v38_v13 = vsub.f32 %v20_v0, %v36_v12 }
  0x7b   :  { %v40_v14 = vmul.f32 %v38_v13, %v38_v13 }
  0x7d   :  { %v42_v15 = vsel %vm22_vm0, %v40_v14, 0.0 }
  0x7e   :  { %43 = vadd.xlane.f32.xlu1 %v42_v15  ;;  %v28_v16 = vpop.xlane.xlu0 %27 }
  0x7f   :  { %v37_v17 = vmul.f32 %v35_v10, %v28_v16 }
  0x81   :  { %v39_v18 = vsub.f32 %v21_v2, %v37_v17 }
  0x83   :  { %v41_v19 = vmul.f32 %v39_v18, %v39_v18 }
  0x85   :  { %v45_v20 = vsel %vm22_vm0, %v41_v19, 0.0 }
  0x86   :  { %46 = vadd.xlane.f32.xlu1 %v45_v20 }
  0xf1   :  { %v44_v25 = vpop.xlane.xlu1 %43 }
  0xf2   :  { %v48_v26 = vmul.f32 %v44_v25, %v35_v10 }
  0xf4   :  { %v50_v27 = vadd.f32 1e-05, %v48_v26 }
  0xf6   :  { %142 = vrsqrt.f32 %v50_v27  ;;  %vm58_vm3 = vweird.f32 %v50_v27 }
  0xf9   :  { %v47_v28 = vpop.xlane.xlu1 %46 }
  0xfa   :  { %v49_v29 = vmul.f32 %v47_v28, %v35_v10 }
  0xfc   :  { %v143_v30 = vpop.eup %142  ;;  %v51_v31 = vadd.f32 1e-05, %v49_v29 }
  0xfd   :  { %v53_v32 = vmul.f32 %v143_v30, %v50_v27  ;;  %vm59_vm2 = vweird.f32 %v143_v30 }
  0xfe   :  { %144 = vrsqrt.f32 %v51_v31  ;;  %vm60_vm4 = vmor %vm58_vm3, %vm59_vm2  ;;  %vm68_vm6 = vweird.f32 %v51_v31 }
  0xff   :  { %v54_v33 = vmul.f32 %v143_v30, %v53_v32 }
 0x101   :  { %v55_v34 = vmul.f32 0.5, %v54_v33 }
 0x103   :  { %v56_v35 = vsub.f32 1.5, %v55_v34 }
 0x104   :  { %v145_v36 = vpop.eup %144 }
 0x105   :  { %v57_v37 = vmul.f32 %v143_v30, %v56_v35  ;;  %v63_v38 = vmul.f32 %v145_v36, %v51_v31  ;;  %vm69_vm5 = vweird.f32 %v145_v36 }
 0x106   :  { %vm70_vm7 = vmor %vm68_vm6, %vm69_vm5 }
 0x107   :  { %v61_v40 = vsel %vm60_vm4, %v143_v30, %v57_v37  ;;  %v64_v41 = vmul.f32 %v145_v36, %v63_v38 }
 0x108   :  { %v72_v42 = vmul.f32 %v61_v40, %v38_v13 }
 0x109   :  { %v65_v44 = vmul.f32 0.5, %v64_v41 }
 0x10a   :  { %v78_v45 = vmul.f32 %v137_v39, %v72_v42 }
 0x10b   :  { %v66_v46 = vsub.f32 1.5, %v65_v44 }
 0x10c   :  { %v84_v47 = vadd.f32 %v138_v43, %v78_v45 }
 0x10d   :  { %v67_v48 = vmul.f32 %v145_v36, %v66_v46 }
 0x10e   :  { %130 = vmatmul.msk.f32.vlgmr.msra.gmra.mxu0 %vm22_vm0, %v84_v47 }
 0x10f   :  { %v71_v49 = vsel %vm70_vm7, %v145_v36, %v67_v48 }
 0x110   :  { %v73_v50 = vmul.f32 %v71_v49, %v39_v18 }
 0x112   :  { %v79_v51 = vmul.f32 %v137_v39, %v73_v50 }
 0x114   :  { %v85_v52 = vadd.f32 %v138_v43, %v79_v51 }
 0x116   :  { %131 = vmatmul.msk.f32.vlgmr.msra.gmra.mxu1 %vm22_vm0, %v85_v52 }
 0x18b   :  { %v117_v54 = vpop.f32.mrf.mxu0 }
 0x18c   :  { %v118_v55 = vadd.f32 %v139_v53, %v117_v54 }
 0x18e   :  { %124 = vst.msk [vmem:[%s221_s5] sm:$0xff] %vm123_vm8, %v118_v55 }
 0x193   :  { %v120_v56 = vpop.f32.mrf.mxu1 }
 0x194   :  { %v121_v57 = vadd.f32 %v139_v53, %v120_v56 }
 0x196   :  { %125 = vst.msk [vmem:[%s221_s5 + $0x8] sm:$0xff] %vm123_vm8, %v121_v57 }

// kernel: ro_perceiver_lm.26
= control target key start
LH: loop header
LB: loop body
LE: loop exit
PB: predicated region body
PF: predicated region fallthrough
CT: control target
= control target key end

     0   :  { %vm25_vm0 = vcmask 130048   ;;  %vm59_vm1 = vcmask 261120   ;;  %s123_s1 = inlined_call_operand.vmem [shape: f32[16,32], index: 1, kind: input, shape index: {}]   ;;  %s124_s0 = inlined_call_operand.vmem [shape: f32[16,16], index: 0, kind: input, shape index: {}]   ;;  %s125_s2 = inlined_call_operand.vmem [shape: f32[1,32], index: 2, kind: input, shape index: {}]   ;;  %s126_s3 = inlined_call_operand.vmem [shape: f32[16,32], index: 3, kind: input, shape index: {}]   ;;  %s127_s4 = inlined_call_operand.vmem [shape: f32[16,32], index: 4, kind: output, shape index: {}]  }
   0x1   :  { %v20_v0 = vld [vmem:[%s123_s1 + $0x8] sm:$0xff]  ;;  %v19_v1 = vld [vmem:[%s123_s1] sm:$0xff] }
   0x2   :  { %46 = vmatpush.msra.mxu0 %v20_v0  ;;  %68 = vmatpush.msra.mxu1 %v20_v0  ;;  %v17_v2 = vld [vmem:[%s124_s0] sm:$0xff]  ;;  %v18_v3 = vld [vmem:[%s124_s0 + $0x8] sm:$0xff] }
   0x3   :  { %v70_v4 = vld [vmem:[%s125_s2] ss:$0 sm:$0xff]  ;;  %v56_v8 = vld [vmem:[%s126_s3 + $0x8] sm:$0xff] }
   0x4   :  { %47 = vmatpush.msra.mxu0 %v19_v1  ;;  %69 = vmatpush.msra.mxu1 %v19_v1  ;;  %v55_v6 = vld [vmem:[%s126_s3] sm:$0xff] }
   0x5   :  { %66 = vmatmul.msk.f32.vlgmr.msra.gmra.mxu0 %vm25_vm0, %v17_v2  ;;  %67 = vmatmul.msk.f32.vlgmr.msra.gmra.mxu1 %vm25_vm0, %v18_v3 }
  0x82   :  { %v49_v5 = vpop.f32.mrf.mxu0  ;;  %v52_v7 = vpop.f32.mrf.mxu1 }
  0x83   :  { %v50_v9 = vadd.f32 %v70_v4, %v49_v5  ;;  %v53_v10 = vadd.f32 %v70_v4, %v52_v7 }
  0x85   :  { %v57_v11 = vadd.f32 %v55_v6, %v50_v9  ;;  %v58_v12 = vadd.f32 %v56_v8, %v53_v10 }
  0x87   :  { %60 = vst.msk [vmem:[%s127_s4] sm:$0xff] %vm59_vm1, %v57_v11 }
  0x88   :  { %61 = vst.msk [vmem:[%s127_s4 + $0x8] sm:$0xff] %vm59_vm1, %v58_v12 }

// kernel: ro_perceiver_lm.28
= control target key start
LH: loop header
LB: loop body
LE: loop exit
PB: predicated region body
PF: predicated region fallthrough
CT: control target
= control target key end

     0   :  { %vm66_vm0 = vcmask 261120   ;;  %s184_s1 = inlined_call_operand.vmem [shape: f32[128,32], index: 1, kind: input, shape index: {}]   ;;  %s185_s2 = inlined_call_operand.vmem [shape: f32[1,32], index: 2, kind: input, shape index: {}]   ;;  %s186_s0 = inlined_call_operand.vmem [shape: f32[16,128], index: 0, kind: input, shape index: {}]   ;;  %s187_s3 = inlined_call_operand.vmem [shape: f32[16,32], index: 3, kind: input, shape index: {}]   ;;  %s188_s4 = inlined_call_operand.vmem [shape: f32[16,32], index: 4, kind: output, shape index: {}]  }
   0x1   :  { %v34_v0 = vld [vmem:[%s184_s1 + $0x78] sm:$0xff]  ;;  %v33_v1 = vld [vmem:[%s184_s1 + $0x70] sm:$0xff]  ;;  %v32_v2 = vld [vmem:[%s184_s1 + $0x68] sm:$0xff] }
   0x2   :  { %39 = vmatpush.msra.mxu0 %v34_v0  ;;  %73 = vmatpush.msra.mxu1 %v34_v0  ;;  %v31_v3 = vld [vmem:[%s184_s1 + $0x60] sm:$0xff]  ;;  %v30_v4 = vld [vmem:[%s184_s1 + $0x58] sm:$0xff]  ;;  %v29_v5 = vld [vmem:[%s184_s1 + $0x50] sm:$0xff] }
   0x3   :  { %v28_v6 = vld [vmem:[%s184_s1 + $0x48] sm:$0xff]  ;;  %v27_v7 = vld [vmem:[%s184_s1 + $0x40] sm:$0xff]  ;;  %v26_v8 = vld [vmem:[%s184_s1 + $0x38] sm:$0xff] }
   0x4   :  { %40 = vmatpush.msra.mxu0 %v33_v1  ;;  %74 = vmatpush.msra.mxu1 %v33_v1  ;;  %v25_v9 = vld [vmem:[%s184_s1 + $0x30] sm:$0xff]  ;;  %v24_v10 = vld [vmem:[%s184_s1 + $0x28] sm:$0xff]  ;;  %v23_v11 = vld [vmem:[%s184_s1 + $0x20] sm:$0xff] }
   0x5   :  { %v22_v12 = vld [vmem:[%s184_s1 + $0x18] sm:$0xff]  ;;  %v21_v13 = vld [vmem:[%s184_s1 + $0x10] sm:$0xff]  ;;  %v20_v14 = vld [vmem:[%s184_s1 + $0x8] sm:$0xff] }
   0x6   :  { %41 = vmatpush.msra.mxu0 %v32_v2  ;;  %75 = vmatpush.msra.mxu1 %v32_v2  ;;  %v19_v15 = vld [vmem:[%s184_s1] sm:$0xff]  ;;  %v18_v17 = vld [vmem:[%s186_s0 + $0x8] sm:$0xff] }
   0x7   :  { %v17_v16 = vld [vmem:[%s186_s0] sm:$0xff]  ;;  %v63_v22 = vld [vmem:[%s187_s3 + $0x8] sm:$0xff] }
   0x8   :  { %42 = vmatpush.msra.mxu0 %v31_v3  ;;  %76 = vmatpush.msra.mxu1 %v31_v3  ;;  %v89_v18 = vld [vmem:[%s185_s2] ss:$0 sm:$0xff] }
   0x9   :  { %v62_v20 = vld [vmem:[%s187_s3] sm:$0xff] }
   0xa   :  { %43 = vmatpush.msra.mxu0 %v30_v4  ;;  %77 = vmatpush.msra.mxu1 %v30_v4 }
   0xc   :  { %44 = vmatpush.msra.mxu0 %v29_v5  ;;  %78 = vmatpush.msra.mxu1 %v29_v5 }
   0xe   :  { %45 = vmatpush.msra.mxu0 %v28_v6  ;;  %79 = vmatpush.msra.mxu1 %v28_v6 }
  0x10   :  { %46 = vmatpush.msra.mxu0 %v27_v7  ;;  %80 = vmatpush.msra.mxu1 %v27_v7 }
  0x12   :  { %47 = vmatpush.msra.mxu0 %v26_v8  ;;  %81 = vmatpush.msra.mxu1 %v26_v8 }
  0x14   :  { %48 = vmatpush.msra.mxu0 %v25_v9  ;;  %82 = vmatpush.msra.mxu1 %v25_v9 }
  0x16   :  { %49 = vmatpush.msra.mxu0 %v24_v10  ;;  %83 = vmatpush.msra.mxu1 %v24_v10 }
  0x18   :  { %50 = vmatpush.msra.mxu0 %v23_v11  ;;  %84 = vmatpush.msra.mxu1 %v23_v11 }
  0x1a   :  { %51 = vmatpush.msra.mxu0 %v22_v12  ;;  %85 = vmatpush.msra.mxu1 %v22_v12 }
  0x1c   :  { %52 = vmatpush.msra.mxu0 %v21_v13  ;;  %86 = vmatpush.msra.mxu1 %v21_v13 }
  0x1e   :  { %53 = vmatpush.msra.mxu0 %v20_v14  ;;  %87 = vmatpush.msra.mxu1 %v20_v14 }
  0x20   :  { %54 = vmatpush.msra.mxu0 %v19_v15  ;;  %88 = vmatpush.msra.mxu1 %v19_v15 }
  0x21   :  { %55 = vmatmul.f32.vlgmr.msra.gmra.mxu0 %v17_v16  ;;  %58 = vmatmul.f32.vlgmr.msra.gmra.mxu1 %v18_v17 }
  0x9e   :  { %v56_v19 = vpop.f32.mrf.mxu0  ;;  %v59_v21 = vpop.f32.mrf.mxu1 }
  0x9f   :  { %v57_v23 = vadd.f32 %v89_v18, %v56_v19  ;;  %v60_v24 = vadd.f32 %v89_v18, %v59_v21 }
  0xa1   :  { %v64_v25 = vadd.f32 %v62_v20, %v57_v23  ;;  %v65_v26 = vadd.f32 %v63_v22, %v60_v24 }
  0xa3   :  { %67 = vst.msk [vmem:[%s188_s4] sm:$0xff] %vm66_vm0, %v64_v25 }
  0xa4   :  { %68 = vst.msk [vmem:[%s188_s4 + $0x8] sm:$0xff] %vm66_vm0, %v65_v26 }

// kernel: ro_perceiver_lm.25
= control target key start
LH: loop header
LB: loop body
LE: loop exit
PB: predicated region body
PF: predicated region fallthrough
CT: control target
= control target key end

     0   :  { %s392_s12 = smov 0   ;;  %s424_s0 = inlined_call_operand.vmem [shape: f32[2,8,128], index: 0, kind: input, shape index: {}]   ;;  %s425_s1 = inlined_call_operand.vmem [shape: f32[2,8,128], index: 1, kind: input, shape index: {}]   ;;  %s426_s2 = inlined_call_operand.vmem [shape: f32[2,8,128], index: 2, kind: input, shape index: {}]   ;;  %s427_s3 = inlined_call_operand.vmem [shape: f32[2,8,128], index: 3, kind: output, shape index: {}]  }
   0x1 LB: > { %s340_s13 = sadd.s32 4294967295, %s370_s12   ;;  %p344_p0 = scmp.ge.s32.totalorder %s370_s12, 1  ;;  %s370_s12 = sphi %s392_s12, %s13_s12  }
   0x2   : > { %p154_p1 = scmp.lt.s32.totalorder %s370_s12, 3 }
   0x4   : > { %p155_p2 = pnand %p344_p0, %p154_p1 }
   0x5   : > { %p184_p3 = scmp.lt.s32.totalorder (!%p155_p2), %s340_s13, 1 }
   0x6   : > { %158 = sbr.rel (%p155_p2) target bundleno = 533 (0x215), region = 32 }
   0xb   : > { %s429_s13 = smov (!%p184_p3, %s340_s13), 1  ;;  %vm224_vm0 = vcmask 64512  }
   0xc   : > { %s400_s14 = sshll.u32 %s429_s13, 3 }
   0xd   : > { %s191_s17 = scalar_lea.vmem %s425_s1, %s400_s14  ;;  %s187_s20 = scalar_lea.vmem %s424_s0, %s400_s14 }
   0xe   : > { %v201_v0 = vld [vmem:[%s191_s17] sm:$0xff]  ;;  %s195_s23 = scalar_lea.vmem %s426_s2, %s400_s14  ;;  %s199_s26 = scalar_lea.vmem %s427_s3, %s400_s14 }
   0xf   : > { %218 = vmatpush.xpose.msra.mxu0 %v201_v0  ;;  %v200_v1 = vld [vmem:[%s187_s20] sm:$0xff] }
  0x10   : > { %v202_v10 = vld [vmem:[%s195_s23] sm:$0xff] }
  0x11   : > { %257 = vmatpush.msra.mxu1 %v202_v10 }
  0x12   : > { %219 = vmatmul.f32.vlgmr.msra.gmra.mxu0 %v200_v1 }
  0x8f   : > { %v220_v2 = vpop.f32.mrf.mxu0 }
  0x90   : > { %v223_v3 = vmul.f32 0.25, %v220_v2 }
  0x92   : > { %v225_v4 = vsel %vm224_vm0, %v223_v3, -inf }
  0x93   : > { %226 = vmax.xlane.f32.xlu0 %v225_v4 }
 0x106   : > { %v227_v5 = vpop.xlane.xlu0 %226 }
 0x107   : > { %v228_v6 = vsub.f32 %v223_v3, %v227_v5 }
 0x109   : > { %v229_v7 = vmul.f32 1.442695, %v228_v6 }
 0x10b   : > { %360 = vpow2.f32 %v229_v7 }
 0x111   : > { %v361_v8 = vpop.eup %360 }
 0x112   : > { %v231_v9 = vsel %vm224_vm0, %v361_v8, 0.0 }
 0x113   : > { %232 = vadd.xlane.f32.xlu0 %v231_v9 }
 0x186   : > { %v233_v11 = vpop.xlane.xlu0 %232 }
 0x187   : > { %362 = vrcp.f32 %v233_v11 }
 0x18d   : > { %v363_v12 = vpop.eup %362 }
 0x18e   : > { %v235_v13 = vmul.f32 %v363_v12, %v233_v11 }
 0x190   : > { %v236_v14 = vsub.f32 2.0, %v235_v13 }
 0x192   : > { %v237_v15 = vmul.f32 %v363_v12, %v236_v14 }
 0x194   : > { %v238_v16 = vmul.f32 %v361_v8, %v237_v15 }
 0x196   : > { %349 = vmatmul.msk.f32.vlgmr.msra.gmra.mxu1 %vm224_vm0, %v238_v16 }
 0x213   : > { %v259_v17 = vpop.f32.mrf.mxu1 }
 0x214   : > { %262 = vst [vmem:[%s199_s26] sm:$0xff] %v259_v17 }
 0x215 PF: > { %s13_s12 = sadd.s32 1, %s370_s12  }
 0x216   : > { %p10_p4 = scmp.ge.s32.totalorder %s13_s12, 4  }
 0x218   :  { %12 = sbr.rel (!%p10_p4) target bundleno = 1 (0x1), region = 68 }

// kernel: ro_perceiver_lm.27
= control target key start
LH: loop header
LB: loop body
LE: loop exit
PB: predicated region body
PF: predicated region fallthrough
CT: control target
= control target key end

     0   :  { %vm28_vm0 = vcmask 261120   ;;  %v280_v4 = vmov 32.0   ;;  %s399_s0 = inlined_call_operand.vmem [shape: f32[16,32], index: 0, kind: input, shape index: {}]   ;;  %s400_s1 = inlined_call_operand.vmem [shape: f32[1,32], index: 1, kind: input, shape index: {}]   ;;  %s401_s2 = inlined_call_operand.vmem [shape: f32[1,32], index: 2, kind: input, shape index: {}]   ;;  %s402_s4 = inlined_call_operand.vmem [shape: f32[1,128], index: 4, kind: input, shape index: {}]   ;;  %s403_s3 = inlined_call_operand.vmem [shape: f32[32,128], index: 3, kind: input, shape index: {}]   ;;  %s404_s5 = inlined_call_operand.vmem [shape: f32[32,128], index: 5, kind: input, shape index: {}]   ;;  %s405_s6 = inlined_call_operand.vmem [shape: f32[1,128], index: 6, kind: input, shape index: {}]   ;;  %s406_s7 = inlined_call_operand.vmem [shape: f32[16,128], index: 7, kind: output, shape index: {}]  }
   0x1   :  { %v27_v0 = vld [vmem:[%s399_s0 + $0x8] sm:$0xff]  ;;  %v26_v2 = vld [vmem:[%s399_s0] sm:$0xff]  ;;  %266 = vrcp.f32 %v280_v4  ;;  %v95_v21 = vld [vmem:[%s403_s3 + $0x18] sm:$0xff] }
   0x2   :  { %v32_v1 = vsel %vm28_vm0, %v27_v0, 0.0  ;;  %v29_v3 = vsel %vm28_vm0, %v26_v2, 0.0  ;;  %v132_v22 = vld [vmem:[%s404_s5 + $0x18] sm:$0xff]  ;;  %252 = vmatpush.msra.mxu2 %v95_v21  ;;  %v94_v23 = vld [vmem:[%s403_s3 + $0x10] sm:$0xff]  ;;  %118 = vmatpush.msra.mxu0 %v95_v21  ;;  %v93_v25 = vld [vmem:[%s403_s3 + $0x8] sm:$0xff] }
   0x3   :  { %33 = vadd.xlane.f32.xlu0 %v32_v1  ;;  %256 = vmatpush.msra.mxu3 %v132_v22  ;;  %v131_v24 = vld [vmem:[%s404_s5 + $0x10] sm:$0xff]  ;;  %v130_v26 = vld [vmem:[%s404_s5 + $0x8] sm:$0xff]  ;;  %v92_v27 = vld [vmem:[%s403_s3] sm:$0xff] }
   0x4   :  { %149 = vmatpush.msra.mxu1 %v132_v22  ;;  %253 = vmatpush.msra.mxu2 %v94_v23  ;;  %v129_v28 = vld [vmem:[%s404_s5] sm:$0xff] }
   0x5   :  { %257 = vmatpush.msra.mxu3 %v131_v24  ;;  %119 = vmatpush.msra.mxu0 %v94_v23  ;;  %v262_v43 = vld [vmem:[%s400_s1] ss:$0 sm:$0xff] }
   0x6   :  { %150 = vmatpush.msra.mxu1 %v131_v24  ;;  %254 = vmatpush.msra.mxu2 %v93_v25  ;;  %v263_v47 = vld [vmem:[%s401_s2] ss:$0 sm:$0xff] }
   0x7   :  { %v267_v5 = vpop.eup %266  ;;  %258 = vmatpush.msra.mxu3 %v130_v26  ;;  %120 = vmatpush.msra.mxu0 %v93_v25  ;;  %v265_v57 = vld [vmem:[%s405_s6] ss:$0 sm:$0xff] }
   0x8   :  { %v36_v6 = vmul.f32 32.0, %v267_v5  ;;  %vm40_vm1 = vweird.f32 %v267_v5  ;;  %151 = vmatpush.msra.mxu1 %v130_v26  ;;  %255 = vmatpush.msra.mxu2 %v92_v27 }
   0x9   :  { %259 = vmatpush.msra.mxu3 %v129_v28  ;;  %121 = vmatpush.msra.mxu0 %v92_v27 }
   0xa   :  { %v37_v7 = vsub.f32 1.0, %v36_v6  ;;  %152 = vmatpush.msra.mxu1 %v129_v28 }
   0xb   :  { %30 = vadd.xlane.f32.xlu0 %v29_v3 }
   0xc   :  { %v38_v8 = vmul.f32 %v267_v5, %v37_v7 }
   0xe   :  { %v39_v9 = vadd.f32 %v267_v5, %v38_v8 }
  0x10   :  { %v41_v10 = vsel %vm40_vm1, %v267_v5, %v39_v9 }
  0x76   :  { %v34_v11 = vpop.xlane.xlu0 %33 }
  0x77   :  { %v43_v12 = vmul.f32 %v41_v10, %v34_v11 }
  0x79   :  { %v45_v13 = vsub.f32 %v27_v0, %v43_v12 }
  0x7b   :  { %v47_v14 = vmul.f32 %v45_v13, %v45_v13 }
  0x7d   :  { %v51_v15 = vsel %vm28_vm0, %v47_v14, 0.0 }
  0x7e   :  { %52 = vadd.xlane.f32.xlu1 %v51_v15  ;;  %v31_v16 = vpop.xlane.xlu0 %30 }
  0x7f   :  { %v42_v17 = vmul.f32 %v41_v10, %v31_v16 }
  0x81   :  { %v331_v18 = vsub.f32 %v26_v2, %v42_v17 }
  0x83   :  { %v46_v19 = vmul.f32 %v331_v18, %v331_v18 }
  0x85   :  { %v48_v20 = vsel %vm28_vm0, %v46_v19, 0.0 }
  0x86   :  { %49 = vadd.xlane.f32.xlu1 %v48_v20 }
  0xf1   :  { %v53_v29 = vpop.xlane.xlu1 %52 }
  0xf2   :  { %v55_v30 = vmul.f32 %v53_v29, %v41_v10 }
  0xf4   :  { %v57_v31 = vadd.f32 1e-05, %v55_v30 }
  0xf6   :  { %268 = vrsqrt.f32 %v57_v31  ;;  %vm74_vm3 = vweird.f32 %v57_v31 }
  0xf9   :  { %v50_v32 = vpop.xlane.xlu1 %49 }
  0xfa   :  { %v54_v33 = vmul.f32 %v50_v32, %v41_v10 }
  0xfc   :  { %v269_v34 = vpop.eup %268  ;;  %v56_v35 = vadd.f32 1e-05, %v54_v33 }
  0xfd   :  { %v69_v36 = vmul.f32 %v269_v34, %v57_v31  ;;  %vm75_vm2 = vweird.f32 %v269_v34 }
  0xfe   :  { %270 = vrsqrt.f32 %v56_v35  ;;  %vm76_vm4 = vmor %vm74_vm3, %vm75_vm2  ;;  %vm64_vm6 = vweird.f32 %v56_v35 }
  0xff   :  { %v70_v37 = vmul.f32 %v269_v34, %v69_v36 }
 0x101   :  { %v71_v38 = vmul.f32 0.5, %v70_v37 }
 0x103   :  { %v72_v39 = vsub.f32 1.5, %v71_v38 }
 0x104   :  { %v271_v40 = vpop.eup %270 }
 0x105   :  { %v73_v41 = vmul.f32 %v269_v34, %v72_v39  ;;  %v59_v42 = vmul.f32 %v271_v40, %v56_v35  ;;  %vm65_vm5 = vweird.f32 %v271_v40 }
 0x106   :  { %vm66_vm7 = vmor %vm64_vm6, %vm65_vm5 }
 0x107   :  { %v77_v44 = vsel %vm76_vm4, %v269_v34, %v73_v41  ;;  %v60_v45 = vmul.f32 %v271_v40, %v59_v42 }
 0x108   :  { %v79_v46 = vmul.f32 %v77_v44, %v45_v13 }
 0x109   :  { %v61_v48 = vmul.f32 0.5, %v60_v45 }
 0x10a   :  { %v85_v49 = vmul.f32 %v262_v43, %v79_v46 }
 0x10b   :  { %v62_v50 = vsub.f32 1.5, %v61_v48 }
 0x10c   :  { %v91_v51 = vadd.f32 %v263_v47, %v85_v49 }
 0x10d   :  { %v63_v52 = vmul.f32 %v271_v40, %v62_v50 }
 0x10e   :  { %249 = vmatmul.msk.f32.vlgmr.msra.gmra.mxu2 %vm28_vm0, %v91_v51  ;;  %251 = vmatmul.msk.f32.vlgmr.msra.gmra.mxu3 %vm28_vm0, %v91_v51 }
 0x10f   :  { %v67_v53 = vsel %vm66_vm7, %v271_v40, %v63_v52 }
 0x110   :  { %v78_v54 = vmul.f32 %v67_v53, %v331_v18 }
 0x112   :  { %v84_v55 = vmul.f32 %v262_v43, %v78_v54  ;;  %v281_v54 = vmov -1.0  }
 0x114   :  { %v90_v56 = vadd.f32 %v263_v47, %v84_v55 }
 0x116   :  { %248 = vmatmul.msk.f32.vlgmr.msra.gmra.mxu0 %vm28_vm0, %v90_v56  ;;  %250 = vmatmul.msk.f32.vlgmr.msra.gmra.mxu1 %vm28_vm0, %v90_v56  ;;  %v264_v56 = vld [vmem:[%s402_s4] ss:$0 sm:$0xff] }
 0x191   :  { %v157_v58 = vpop.f32.mrf.mxu3 }
 0x192   :  { %v374_v59 = vadd.f32 %v265_v57, %v157_v58 }
 0x193   :  { %v154_v60 = vpop.f32.mrf.mxu1 }
 0x194   :  { %v377_v61 = vmul.f32 0.70710677, %v374_v59  ;;  %v379_v62 = vadd.f32 %v265_v57, %v154_v60  ;;  %v126_v60 = vpop.f32.mrf.mxu2 }
 0x196   :  { %v169_v63 = vand.u32 2147483647, %v377_v61  ;;  %v383_v0 = vmul.f32 0.70710677, %v379_v62  ;;  %vm165_vm0 = vcmp.ge.f32.partialorder %v377_v61, 0.0 }
 0x197   :  { %v167_v55 = vsel %vm165_vm0, 1.0, %v281_v54 }
 0x198   :  { %v171_v1 = vmul.f32 0.3275911, %v169_v63  ;;  %v168_v2 = vand.u32 2147483647, %v383_v0  ;;  %v223_v22 = vsub.f32 0.0, %v169_v63  ;;  %vm164_vm1 = vcmp.ge.f32.partialorder %v383_v0, 0.0 }
 0x19a   :  { %v173_v3 = vadd.f32 1.0, %v171_v1  ;;  %v170_v4 = vmul.f32 0.3275911, %v168_v2  ;;  %v225_v28 = vmul.f32 %v223_v22, %v169_v63  ;;  %v222_v30 = vsub.f32 0.0, %v168_v2 }
 0x19b   :  { %v161_v63 = vmul.f32 0.5, %v374_v59 }
 0x19c   :  { %272 = vrcp.f32 %v173_v3  ;;  %v172_v5 = vadd.f32 1.0, %v170_v4  ;;  %v198_v10 = vand.u32 2147483647, %v173_v3  ;;  %v200_v11 = vand.u32 2147483648, %v173_v3 }
 0x19d   :  { %vm194_vm9 = vweird.f32 %v173_v3  ;;  %v228_v35 = vmul.f32 1.442695, %v225_v28  ;;  %v224_v36 = vmul.f32 %v222_v30, %v168_v2  ;;  %v166_v2 = vsel %vm164_vm1, 1.0, %v281_v54 }
 0x19e   :  { %274 = vrcp.f32 %v172_v5  ;;  %vm199_vm11 = vcmp.eq.f32.partialorder %v198_v10, 8.507059e+37  ;;  %v201_v16 = vor.u32 1.1754944e-38, %v200_v11  ;;  %v185_v17 = vand.u32 2147483648, %v172_v5 }
 0x19f   :  { %v183_v20 = vand.u32 2147483647, %v172_v5  ;;  %vm179_vm13 = vweird.f32 %v172_v5  ;;  %276 = vpow2.f32 %v228_v35  ;;  %v226_v41 = vmul.f32 1.442695, %v224_v36 }
 0x1a0   :  { %v186_v25 = vor.u32 1.1754944e-38, %v185_v17 }
 0x1a1   :  { %vm184_vm15 = vcmp.eq.f32.partialorder %v183_v20, 8.507059e+37  ;;  %278 = vpow2.f32 %v226_v41 }
 0x1a2   :  { %v273_v6 = vpop.eup %272 }
 0x1a3   :  { %v190_v7 = vmul.f32 %v273_v6, %v173_v3  ;;  %vm195_vm8 = vweird.f32 %v273_v6  ;;  %v127_v3 = vadd.f32 %v264_v56, %v126_v60 }
 0x1a4   :  { %v275_v9 = vpop.eup %274  ;;  %vm196_vm10 = vmor %vm194_vm9, %vm195_vm8 }
 0x1a5   :  { %v191_v8 = vsub.f32 1.0, %v190_v7  ;;  %v175_v13 = vmul.f32 %v275_v9, %v172_v5  ;;  %vm180_vm12 = vweird.f32 %v275_v9  ;;  %v277_v48 = vpop.eup %276 }
 0x1a6   :  { %vm181_vm14 = vmor %vm179_vm13, %vm180_vm12 }
 0x1a7   :  { %v192_v12 = vmul.f32 %v273_v6, %v191_v8  ;;  %v176_v15 = vsub.f32 1.0, %v175_v13  ;;  %v279_v53 = vpop.eup %278  ;;  %v160_v8 = vmul.f32 0.5, %v379_v62 }
 0x1a9   :  { %v193_v14 = vadd.f32 %v273_v6, %v192_v12  ;;  %v177_v19 = vmul.f32 %v275_v9, %v176_v15 }
 0x1ab   :  { %v197_v18 = vsel %vm196_vm10, %v273_v6, %v193_v14  ;;  %v178_v24 = vadd.f32 %v275_v9, %v177_v19  ;;  %v123_v6 = vpop.f32.mrf.mxu0 }
 0x1ac   :  { %v202_v21 = vsel %vm199_vm11, %v201_v16, %v197_v18  ;;  %v124_v0 = vadd.f32 %v264_v56, %v123_v6 }
 0x1ad   :  { %v205_v23 = vmul.f32 1.0614054, %v202_v21  ;;  %v182_v27 = vsel %vm181_vm14, %v275_v9, %v178_v24 }
 0x1ae   :  { %v187_v29 = vsel %vm184_vm15, %v186_v25, %v182_v27 }
 0x1af   :  { %v207_v26 = vadd.f32 -1.4531521, %v205_v23  ;;  %v204_v32 = vmul.f32 1.0614054, %v187_v29 }
 0x1b1   :  { %v209_v31 = vmul.f32 %v207_v26, %v202_v21  ;;  %v206_v34 = vadd.f32 -1.4531521, %v204_v32 }
 0x1b3   :  { %v211_v33 = vadd.f32 1.4214138, %v209_v31  ;;  %v208_v38 = vmul.f32 %v206_v34, %v187_v29 }
 0x1b5   :  { %v213_v37 = vmul.f32 %v211_v33, %v202_v21  ;;  %v210_v40 = vadd.f32 1.4214138, %v208_v38 }
 0x1b7   :  { %v215_v39 = vadd.f32 -0.28449672, %v213_v37  ;;  %v212_v43 = vmul.f32 %v210_v40, %v187_v29 }
 0x1b9   :  { %v217_v42 = vmul.f32 %v215_v39, %v202_v21  ;;  %v214_v45 = vadd.f32 -0.28449672, %v212_v43 }
 0x1bb   :  { %v219_v44 = vadd.f32 0.2548296, %v217_v42  ;;  %v216_v47 = vmul.f32 %v214_v45, %v187_v29 }
 0x1bd   :  { %v221_v46 = vmul.f32 %v219_v44, %v202_v21  ;;  %v218_v50 = vadd.f32 0.2548296, %v216_v47 }
 0x1bf   :  { %v231_v49 = vmul.f32 %v277_v48, %v221_v46  ;;  %v220_v52 = vmul.f32 %v218_v50, %v187_v29 }
 0x1c1   :  { %v233_v51 = vsub.f32 1.0, %v231_v49  ;;  %v230_v58 = vmul.f32 %v279_v53, %v220_v52 }
 0x1c3   :  { %v235_v57 = vmul.f32 %v233_v51, %v167_v55  ;;  %v232_v61 = vsub.f32 1.0, %v230_v58 }
 0x1c5   :  { %v237_v1 = vadd.f32 1.0, %v235_v57  ;;  %v234_v5 = vmul.f32 %v232_v61, %v166_v2 }
 0x1c7   :  { %v239_v4 = vmul.f32 %v237_v1, %v161_v63  ;;  %v236_v9 = vadd.f32 1.0, %v234_v5 }
 0x1c9   :  { %v241_v7 = vmul.f32 %v239_v4, %v127_v3  ;;  %v238_v10 = vmul.f32 %v236_v9, %v160_v8 }
 0x1cb   :  { %243 = vst [vmem:[%s406_s7 + $0x8] sm:$0xff] %v241_v7  ;;  %v240_v11 = vmul.f32 %v238_v10, %v124_v0 }
 0x1cd   :  { %242 = vst [vmem:[%s406_s7] sm:$0xff] %v240_v11 }

// kernel: ro_perceiver_lm.30
= control target key start
LH: loop header
LB: loop body
LE: loop exit
PB: predicated region body
PF: predicated region fallthrough
CT: control target
= control target key end

     0   :  { %s392_s12 = smov 0   ;;  %s424_s0 = inlined_call_operand.vmem [shape: f32[4,8,128], index: 0, kind: input, shape index: {}]   ;;  %s425_s1 = inlined_call_operand.vmem [shape: f32[4,8,128], index: 1, kind: input, shape index: {}]   ;;  %s426_s2 = inlined_call_operand.vmem [shape: f32[4,8,128], index: 2, kind: input, shape index: {}]   ;;  %s427_s3 = inlined_call_operand.vmem [shape: f32[4,8,128], index: 3, kind: output, shape index: {}]  }
   0x1 LB: > { %s340_s13 = sadd.s32 4294967295, %s370_s12   ;;  %p344_p0 = scmp.ge.s32.totalorder %s370_s12, 1  ;;  %s370_s12 = sphi %s392_s12, %s13_s12  }
   0x2   : > { %p154_p1 = scmp.lt.s32.totalorder %s370_s12, 5 }
   0x4   : > { %p155_p2 = pnand %p344_p0, %p154_p1 }
   0x5   : > { %p184_p3 = scmp.lt.s32.totalorder (!%p155_p2), %s340_s13, 3 }
   0x6   : > { %158 = sbr.rel (%p155_p2) target bundleno = 533 (0x215), region = 32 }
   0xb   : > { %s429_s13 = smov (!%p184_p3, %s340_s13), 3  ;;  %vm224_vm0 = vcmask 64512  }
   0xc   : > { %s400_s14 = sshll.u32 %s429_s13, 3 }
   0xd   : > { %s191_s17 = scalar_lea.vmem %s425_s1, %s400_s14  ;;  %s187_s20 = scalar_lea.vmem %s424_s0, %s400_s14 }
   0xe   : > { %v201_v0 = vld [vmem:[%s191_s17] sm:$0xff]  ;;  %s195_s23 = scalar_lea.vmem %s426_s2, %s400_s14  ;;  %s199_s26 = scalar_lea.vmem %s427_s3, %s400_s14 }
   0xf   : > { %218 = vmatpush.xpose.msra.mxu0 %v201_v0  ;;  %v200_v1 = vld [vmem:[%s187_s20] sm:$0xff] }
  0x10   : > { %v202_v10 = vld [vmem:[%s195_s23] sm:$0xff] }
  0x11   : > { %257 = vmatpush.msra.mxu1 %v202_v10 }
  0x12   : > { %219 = vmatmul.f32.vlgmr.msra.gmra.mxu0 %v200_v1 }
  0x8f   : > { %v220_v2 = vpop.f32.mrf.mxu0 }
  0x90   : > { %v223_v3 = vmul.f32 0.25, %v220_v2 }
  0x92   : > { %v225_v4 = vsel %vm224_vm0, %v223_v3, -inf }
  0x93   : > { %226 = vmax.xlane.f32.xlu0 %v225_v4 }
 0x106   : > { %v227_v5 = vpop.xlane.xlu0 %226 }
 0x107   : > { %v228_v6 = vsub.f32 %v223_v3, %v227_v5 }
 0x109   : > { %v229_v7 = vmul.f32 1.442695, %v228_v6 }
 0x10b   : > { %360 = vpow2.f32 %v229_v7 }
 0x111   : > { %v361_v8 = vpop.eup %360 }
 0x112   : > { %v231_v9 = vsel %vm224_vm0, %v361_v8, 0.0 }
 0x113   : > { %232 = vadd.xlane.f32.xlu0 %v231_v9 }
 0x186   : > { %v233_v11 = vpop.xlane.xlu0 %232 }
 0x187   : > { %362 = vrcp.f32 %v233_v11 }
 0x18d   : > { %v363_v12 = vpop.eup %362 }
 0x18e   : > { %v235_v13 = vmul.f32 %v363_v12, %v233_v11 }
 0x190   : > { %v236_v14 = vsub.f32 2.0, %v235_v13 }
 0x192   : > { %v237_v15 = vmul.f32 %v363_v12, %v236_v14 }
 0x194   : > { %v238_v16 = vmul.f32 %v361_v8, %v237_v15 }
 0x196   : > { %349 = vmatmul.msk.f32.vlgmr.msra.gmra.mxu1 %vm224_vm0, %v238_v16 }
 0x213   : > { %v259_v17 = vpop.f32.mrf.mxu1 }
 0x214   : > { %262 = vst [vmem:[%s199_s26] sm:$0xff] %v259_v17 }
 0x215 PF: > { %s13_s12 = sadd.s32 1, %s370_s12  }
 0x216   : > { %p10_p4 = scmp.ge.s32.totalorder %s13_s12, 6  }
 0x218   :  { %12 = sbr.rel (!%p10_p4) target bundleno = 1 (0x1), region = 68 }

// kernel: ro_perceiver_lm.31
= control target key start
LH: loop header
LB: loop body
LE: loop exit
PB: predicated region body
PF: predicated region fallthrough
CT: control target
= control target key end

     0   :  { %vm27_vm0 = vcmask 261120   ;;  %s136_s1 = inlined_call_operand.vmem [shape: f32[32,32], index: 1, kind: input, shape index: {}]   ;;  %s137_s2 = inlined_call_operand.vmem [shape: f32[1,32], index: 2, kind: input, shape index: {}]   ;;  %s138_s0 = inlined_call_operand.vmem [shape: f32[16,32], index: 0, kind: input, shape index: {}]   ;;  %s139_s3 = inlined_call_operand.vmem [shape: f32[16,32], index: 3, kind: input, shape index: {}]   ;;  %s140_s4 = inlined_call_operand.vmem [shape: f32[16,32], index: 4, kind: output, shape index: {}]  }
   0x1   :  { %v22_v0 = vld [vmem:[%s136_s1 + $0x18] sm:$0xff]  ;;  %v21_v1 = vld [vmem:[%s136_s1 + $0x10] sm:$0xff]  ;;  %v20_v2 = vld [vmem:[%s136_s1 + $0x8] sm:$0xff] }
   0x2   :  { %46 = vmatpush.msra.mxu0 %v22_v0  ;;  %69 = vmatpush.msra.mxu1 %v22_v0  ;;  %v19_v3 = vld [vmem:[%s136_s1] sm:$0xff]  ;;  %v18_v5 = vld [vmem:[%s138_s0 + $0x8] sm:$0xff] }
   0x3   :  { %v17_v4 = vld [vmem:[%s138_s0] sm:$0xff]  ;;  %v58_v10 = vld [vmem:[%s139_s3 + $0x8] sm:$0xff] }
   0x4   :  { %47 = vmatpush.msra.mxu0 %v21_v1  ;;  %70 = vmatpush.msra.mxu1 %v21_v1  ;;  %v73_v6 = vld [vmem:[%s137_s2] ss:$0 sm:$0xff] }
   0x5   :  { %v57_v8 = vld [vmem:[%s139_s3] sm:$0xff] }
   0x6   :  { %48 = vmatpush.msra.mxu0 %v20_v2  ;;  %71 = vmatpush.msra.mxu1 %v20_v2 }
   0x8   :  { %49 = vmatpush.msra.mxu0 %v19_v3  ;;  %72 = vmatpush.msra.mxu1 %v19_v3 }
   0x9   :  { %67 = vmatmul.msk.f32.vlgmr.msra.gmra.mxu0 %vm27_vm0, %v17_v4  ;;  %68 = vmatmul.msk.f32.vlgmr.msra.gmra.mxu1 %vm27_vm0, %v18_v5 }
  0x86   :  { %v51_v7 = vpop.f32.mrf.mxu0  ;;  %v54_v9 = vpop.f32.mrf.mxu1 }
  0x87   :  { %v52_v11 = vadd.f32 %v73_v6, %v51_v7  ;;  %v55_v12 = vadd.f32 %v73_v6, %v54_v9 }
  0x89   :  { %v59_v13 = vadd.f32 %v57_v8, %v52_v11  ;;  %v60_v14 = vadd.f32 %v58_v10, %v55_v12 }
  0x8b   :  { %61 = vst.msk [vmem:[%s140_s4] sm:$0xff] %vm27_vm0, %v59_v13 }
  0x8c   :  { %62 = vst.msk [vmem:[%s140_s4 + $0x8] sm:$0xff] %vm27_vm0, %v60_v14 }

// kernel: ro_perceiver_lm.29
= control target key start
LH: loop header
LB: loop body
LE: loop exit
PB: predicated region body
PF: predicated region fallthrough
CT: control target
= control target key end

     0   :  { %vm22_vm0 = vcmask 261120   ;;  %v146_v4 = vmov 32.0   ;;  %vm123_vm8 = vcmask 785408   ;;  %s216_s0 = inlined_call_operand.vmem [shape: f32[16,32], index: 0, kind: input, shape index: {}]   ;;  %s217_s1 = inlined_call_operand.vmem [shape: f32[1,32], index: 1, kind: input, shape index: {}]   ;;  %s218_s2 = inlined_call_operand.vmem [shape: f32[1,32], index: 2, kind: input, shape index: {}]   ;;  %s219_s4 = inlined_call_operand.vmem [shape: f32[1,96], index: 4, kind: input, shape index: {}]   ;;  %s220_s3 = inlined_call_operand.vmem [shape: f32[32,96], index: 3, kind: input, shape index: {}]   ;;  %s221_s5 = inlined_call_operand.vmem [shape: f32[16,96], index: 5, kind: output, shape index: {}]  }
   0x1   :  { %v20_v0 = vld [vmem:[%s216_s0] sm:$0xff]  ;;  %v21_v2 = vld [vmem:[%s216_s0 + $0x8] sm:$0xff]  ;;  %140 = vrcp.f32 %v146_v4  ;;  %v89_v21 = vld [vmem:[%s220_s3 + $0x18] sm:$0xff] }
   0x2   :  { %v23_v1 = vsel %vm22_vm0, %v20_v0, 0.0  ;;  %v26_v3 = vsel %vm22_vm0, %v21_v2, 0.0  ;;  %112 = vmatpush.msra.mxu0 %v89_v21  ;;  %132 = vmatpush.msra.mxu1 %v89_v21  ;;  %v88_v22 = vld [vmem:[%s220_s3 + $0x10] sm:$0xff]  ;;  %v87_v23 = vld [vmem:[%s220_s3 + $0x8] sm:$0xff]  ;;  %v86_v24 = vld [vmem:[%s220_s3] sm:$0xff] }
   0x3   :  { %24 = vadd.xlane.f32.xlu0 %v23_v1  ;;  %v137_v39 = vld [vmem:[%s217_s1] ss:$0 sm:$0xff] }
   0x4   :  { %113 = vmatpush.msra.mxu0 %v88_v22  ;;  %133 = vmatpush.msra.mxu1 %v88_v22  ;;  %v138_v43 = vld [vmem:[%s218_s2] ss:$0 sm:$0xff] }
   0x5   :  { %v139_v53 = vld [vmem:[%s219_s4] ss:$0 sm:$0xff] }
   0x6   :  { %114 = vmatpush.msra.mxu0 %v87_v23  ;;  %134 = vmatpush.msra.mxu1 %v87_v23 }
   0x7   :  { %v141_v5 = vpop.eup %140 }
   0x8   :  { %v30_v6 = vmul.f32 32.0, %v141_v5  ;;  %vm34_vm1 = vweird.f32 %v141_v5  ;;  %115 = vmatpush.msra.mxu0 %v86_v24  ;;  %135 = vmatpush.msra.mxu1 %v86_v24 }
   0xa   :  { %v31_v7 = vsub.f32 1.0, %v30_v6 }
   0xb   :  { %27 = vadd.xlane.f32.xlu0 %v26_v3 }
   0xc   :  { %v32_v8 = vmul.f32 %v141_v5, %v31_v7 }
   0xe   :  { %v33_v9 = vadd.f32 %v141_v5, %v32_v8 }
  0x10   :  { %v35_v10 = vsel %vm34_vm1, %v141_v5, %v33_v9 }
  0x76   :  { %v25_v11 = vpop.xlane.xlu0 %24 }
  0x77   :  { %v36_v12 = vmul.f32 %v35_v10, %v25_v11 }
  0x79   :  { %v38_v13 = vsub.f32 %v20_v0, %v36_v12 }
  0x7b   :  { %v40_v14 = vmul.f32 %v38_v13, %v38_v13 }
  0x7d   :  { %v42_v15 = vsel %vm22_vm0, %v40_v14, 0.0 }
  0x7e   :  { %43 = vadd.xlane.f32.xlu1 %v42_v15  ;;  %v28_v16 = vpop.xlane.xlu0 %27 }
  0x7f   :  { %v37_v17 = vmul.f32 %v35_v10, %v28_v16 }
  0x81   :  { %v39_v18 = vsub.f32 %v21_v2, %v37_v17 }
  0x83   :  { %v41_v19 = vmul.f32 %v39_v18, %v39_v18 }
  0x85   :  { %v45_v20 = vsel %vm22_vm0, %v41_v19, 0.0 }
  0x86   :  { %46 = vadd.xlane.f32.xlu1 %v45_v20 }
  0xf1   :  { %v44_v25 = vpop.xlane.xlu1 %43 }
  0xf2   :  { %v48_v26 = vmul.f32 %v44_v25, %v35_v10 }
  0xf4   :  { %v50_v27 = vadd.f32 1e-05, %v48_v26 }
  0xf6   :  { %142 = vrsqrt.f32 %v50_v27  ;;  %vm58_vm3 = vweird.f32 %v50_v27 }
  0xf9   :  { %v47_v28 = vpop.xlane.xlu1 %46 }
  0xfa   :  { %v49_v29 = vmul.f32 %v47_v28, %v35_v10 }
  0xfc   :  { %v143_v30 = vpop.eup %142  ;;  %v51_v31 = vadd.f32 1e-05, %v49_v29 }
  0xfd   :  { %v53_v32 = vmul.f32 %v143_v30, %v50_v27  ;;  %vm59_vm2 = vweird.f32 %v143_v30 }
  0xfe   :  { %144 = vrsqrt.f32 %v51_v31  ;;  %vm60_vm4 = vmor %vm58_vm3, %vm59_vm2  ;;  %vm68_vm6 = vweird.f32 %v51_v31 }
  0xff   :  { %v54_v33 = vmul.f32 %v143_v30, %v53_v32 }
 0x101   :  { %v55_v34 = vmul.f32 0.5, %v54_v33 }
 0x103   :  { %v56_v35 = vsub.f32 1.5, %v55_v34 }
 0x104   :  { %v145_v36 = vpop.eup %144 }
 0x105   :  { %v57_v37 = vmul.f32 %v143_v30, %v56_v35  ;;  %v63_v38 = vmul.f32 %v145_v36, %v51_v31  ;;  %vm69_vm5 = vweird.f32 %v145_v36 }
 0x106   :  { %vm70_vm7 = vmor %vm68_vm6, %vm69_vm5 }
 0x107   :  { %v61_v40 = vsel %vm60_vm4, %v143_v30, %v57_v37  ;;  %v64_v41 = vmul.f32 %v145_v36, %v63_v38 }
 0x108   :  { %v72_v42 = vmul.f32 %v61_v40, %v38_v13 }
 0x109   :  { %v65_v44 = vmul.f32 0.5, %v64_v41 }
 0x10a   :  { %v78_v45 = vmul.f32 %v137_v39, %v72_v42 }
 0x10b   :  { %v66_v46 = vsub.f32 1.5, %v65_v44 }
 0x10c   :  { %v84_v47 = vadd.f32 %v138_v43, %v78_v45 }
 0x10d   :  { %v67_v48 = vmul.f32 %v145_v36, %v66_v46 }
 0x10e   :  { %130 = vmatmul.msk.f32.vlgmr.msra.gmra.mxu0 %vm22_vm0, %v84_v47 }
 0x10f   :  { %v71_v49 = vsel %vm70_vm7, %v145_v36, %v67_v48 }
 0x110   :  { %v73_v50 = vmul.f32 %v71_v49, %v39_v18 }
 0x112   :  { %v79_v51 = vmul.f32 %v137_v39, %v73_v50 }
 0x114   :  { %v85_v52 = vadd.f32 %v138_v43, %v79_v51 }
 0x116   :  { %131 = vmatmul.msk.f32.vlgmr.msra.gmra.mxu1 %vm22_vm0, %v85_v52 }
 0x18b   :  { %v117_v54 = vpop.f32.mrf.mxu0 }
 0x18c   :  { %v118_v55 = vadd.f32 %v139_v53, %v117_v54 }
 0x18e   :  { %124 = vst.msk [vmem:[%s221_s5] sm:$0xff] %vm123_vm8, %v118_v55 }
 0x193   :  { %v120_v56 = vpop.f32.mrf.mxu1 }
 0x194   :  { %v121_v57 = vadd.f32 %v139_v53, %v120_v56 }
 0x196   :  { %125 = vst.msk [vmem:[%s221_s5 + $0x8] sm:$0xff] %vm123_vm8, %v121_v57 }

// kernel: ro_perceiver_lm.42
= control target key start
LH: loop header
LB: loop body
LE: loop exit
PB: predicated region body
PF: predicated region fallthrough
CT: control target
= control target key end

     0   :  { %vm22_vm0 = vcmask 130048   ;;  %vm52_vm1 = vcmask 261120   ;;  %s105_s1 = inlined_call_operand.vmem [shape: f32[16,32], index: 1, kind: input, shape index: {}]   ;;  %s106_s0 = inlined_call_operand.vmem [shape: f32[16,16], index: 0, kind: input, shape index: {}]   ;;  %s107_s2 = inlined_call_operand.vmem [shape: f32[1,32], index: 2, kind: input, shape index: {}]   ;;  %s108_s3 = inlined_call_operand.vmem [shape: f32[16,32], index: 3, kind: output, shape index: {}]  }
   0x1   :  { %v17_v0 = vld [vmem:[%s105_s1 + $0x8] sm:$0xff]  ;;  %v16_v1 = vld [vmem:[%s105_s1] sm:$0xff] }
   0x2   :  { %43 = vmatpush.msra.mxu0 %v17_v0  ;;  %61 = vmatpush.msra.mxu1 %v17_v0  ;;  %v14_v2 = vld [vmem:[%s106_s0] sm:$0xff]  ;;  %v15_v3 = vld [vmem:[%s106_s0 + $0x8] sm:$0xff] }
   0x3   :  { %v63_v4 = vld [vmem:[%s107_s2] ss:$0 sm:$0xff] }
   0x4   :  { %44 = vmatpush.msra.mxu0 %v16_v1  ;;  %62 = vmatpush.msra.mxu1 %v16_v1 }
   0x5   :  { %59 = vmatmul.msk.f32.vlgmr.msra.gmra.mxu0 %vm22_vm0, %v14_v2  ;;  %60 = vmatmul.msk.f32.vlgmr.msra.gmra.mxu1 %vm22_vm0, %v15_v3 }
  0x82   :  { %v46_v5 = vpop.f32.mrf.mxu0  ;;  %v49_v6 = vpop.f32.mrf.mxu1 }
  0x83   :  { %v47_v7 = vadd.f32 %v63_v4, %v46_v5  ;;  %v50_v8 = vadd.f32 %v63_v4, %v49_v6 }
  0x85   :  { %53 = vst.msk [vmem:[%s108_s3] sm:$0xff] %vm52_vm1, %v47_v7 }
  0x86   :  { %54 = vst.msk [vmem:[%s108_s3 + $0x8] sm:$0xff] %vm52_vm1, %v50_v8 }

// kernel: ro_perceiver_lm.45
= control target key start
LH: loop header
LB: loop body
LE: loop exit
PB: predicated region body
PF: predicated region fallthrough
CT: control target
= control target key end

     0   :  { %s159_s0 = inlined_call_operand.vmem [shape: f32[16,32], index: 0, kind: input, shape index: {}]   ;;  %s160_s1 = inlined_call_operand.vmem [shape: f32[32,64], index: 1, kind: input, shape index: {}]   ;;  %s161_s2 = inlined_call_operand.vmem [shape: f32[1,64], index: 2, kind: input, shape index: {}]   ;;  %s162_s3 = inlined_call_operand.hbm [shape: f32[16,64], index: 3, kind: output, shape index: {}]  }
   0x1   :  { %v20_v0 = vld [vmem:[%s160_s1 + $0x18] sm:$0xff]  ;;  %v19_v1 = vld [vmem:[%s160_s1 + $0x10] sm:$0xff]  ;;  %v18_v2 = vld [vmem:[%s160_s1 + $0x8] sm:$0xff] }
   0x2   :  { %44 = vmatpush.msra.mxu0 %v20_v0  ;;  %78 = vmatpush.msra.mxu1 %v20_v0 }
   0x3   :  { %8 = vsyncpa [#allocation3], 0  ;;  %v17_v3 = vld [vmem:[%s160_s1] sm:$0xff]  ;;  %vm25_vm0 = vcmask 261120   ;;  %v16_v5 = vld [vmem:[%s159_s0 + $0x8] sm:$0xff]  ;;  %s112_s1 = smov [#allocation2]  }
   0x4   :  { %45 = vmatpush.msra.mxu0 %v19_v1  ;;  %79 = vmatpush.msra.mxu1 %v19_v1  ;;  %v15_v4 = vld [vmem:[%s159_s0] sm:$0xff]  ;;  %s62_s26 = sshll.u32 %s112_s1, 4  ;;  %s64_s29 = sshll.u32 %s162_s3, 4  ;;  %vm55_vm1 = vcmask 523264   ;;  %s63_s26 = int_to_ptr.vmem [resolvable:$true] %s62_s26  ;;  %s65_s29 = int_to_ptr.hbm [resolvable:$true] %s64_s29 }
   0x5   :  { %v85_v6 = vld [vmem:[%s161_s2] ss:$0 sm:$0xff]  ;;  %s113_s0 = smov 128   ;;  %s114_s30 = smov 8  }
   0x6   :  { %46 = vmatpush.msra.mxu0 %v18_v2  ;;  %80 = vmatpush.msra.mxu1 %v18_v2 }
   0x8   :  { %47 = vmatpush.msra.mxu0 %v17_v3  ;;  %81 = vmatpush.msra.mxu1 %v17_v3 }
   0x9   :  { %76 = vmatmul.msk.f32.vlgmr.msra.gmra.mxu0 %vm25_vm0, %v15_v4  ;;  %77 = vmatmul.msk.f32.vlgmr.msra.gmra.mxu1 %vm25_vm0, %v16_v5 }
  0x86   :  { %v49_v7 = vpop.f32.mrf.mxu0  ;;  %v52_v8 = vpop.f32.mrf.mxu1 }
  0x87   :  { %v50_v9 = vadd.f32 %v85_v6, %v49_v7  ;;  %v53_v10 = vadd.f32 %v85_v6, %v52_v8 }
  0x89   :  { %56 = vst.msk [vmem:[#allocation2] sm:$0xff] %vm55_vm1, %v50_v9 }
  0x8a   :  { %57 = vst.msk [vmem:[#allocation2 + $0x8] sm:$0xff] %vm55_vm1, %v53_v10 }
  0x8b   :  { %70 = dma.vmem_to_hbm [thread:$0]  %s63_s26, 256, %s65_s29, [#allocation3], %s113_s0, %s113_s0, %s114_s30  }
  0x8c   :  { %110 = dma.done.wait [#allocation3], 256  }
  0x8d   :  { %111 = vsyncadd [#allocation3], 4294967040 }
  0x8e   :  { %75 = vsyncpa [#allocation3], 1 }

</bundles_post_ra>
